<compile_context>
chip_gen: v5e
topology: v5e:2x2
jax: 0.10.0
libtpu: 0.0.40
codegen_flags: <defaults>
</compile_context>

<pallas_src>
import functools

import jax
import jax.numpy as jnp
from jax.experimental import pallas as pl
from jax.experimental.pallas import tpu as pltpu

_MIB = 1024 * 1024


def _round_up(v, m):
    return ((v + m - 1) // m) * m


def _pad_to(arr, shape, dtype):
    """Zero-pad `arr` (top-left aligned) to `shape` and cast to `dtype`."""
    arr = arr.astype(dtype)
    if tuple(arr.shape) == tuple(shape):
        return arr
    out = jnp.zeros(shape, dtype)
    return out.at[tuple(slice(0, s) for s in arr.shape)].set(arr)


def _vmem_policy():
    """Generation-aware (vmem_limit_bytes, window-batch budget, min grid steps)."""
    try:
        cap = pltpu.get_tpu_info().vmem_capacity_bytes
    except Exception:  # pragma: no cover - unknown backend, stay conservative
        cap = None
    if cap is not None and cap > 64 * _MIB:
        # v5e / v6e class: 128 MiB physical VMEM -> use much more of it,
        # single TensorCore so >=2 grid steps is enough for pipelining.
        return 80 * _MIB, 56 * _MIB, 2
    # v7x class (64 MiB physical, 32 MiB default scoped) or unknown: keep the
    # conservative budget, and prefer >=4 grid steps (>=2 per TensorCore).
    return 32 * _MIB, 20 * _MIB, 4


def _window_attn_kernel(x_ref, wqkv_ref, bqkv_ref, wproj_ref, bproj_ref,
                        o_ref, *, num_heads, head_dim, seg, n_real):
    # One grid step == WB windows.
    wb, n_p, c_in_p = x_ref.shape
    m = wb * n_p
    compute_dtype = x_ref.dtype          # bf16 (or whatever the wrapper chose)

    # ---- qkv projection: one big MXU matmul over all WB*N tokens ----------
    # scale is already folded into the Q columns of wqkv / bqkv.
    x2d = x_ref[...].reshape(m, c_in_p)                       # (M, C_pad)
    qkv = jnp.dot(x2d, wqkv_ref[...],
                  preferred_element_type=jnp.float32)         # (M, 3*seg) f32
    qkv = (qkv + bqkv_ref[...]).astype(compute_dtype)         # cast once

    need_mask = n_p != n_real
    key_mask = None
    if need_mask:
        col = jax.lax.broadcasted_iota(jnp.int32, (wb, n_p, n_p), 2)
        key_mask = col < n_real                               # mask padded keys

    # ---- per-head attention (static head loop; no XLU transposes) ---------
    head_outs = []
    for h in range(num_heads):
        lo = h * head_dim
        q = qkv[:, lo:lo + head_dim].reshape(wb, n_p, head_dim)
        k = qkv[:, seg + lo:seg + lo + head_dim].reshape(wb, n_p, head_dim)
        v = qkv[:, 2 * seg + lo:2 * seg + lo + head_dim].reshape(wb, n_p, head_dim)

        # scores: (WB, N, N), f32
        s = jnp.einsum('bnd,bmd->bnm', q, k,
                       preferred_element_type=jnp.float32)
        if need_mask:
            s = jnp.where(key_mask, s, -1e30)
        s_max = jnp.max(s, axis=-1, keepdims=True)
        p = jnp.exp(s - s_max)
        p = p * pl.reciprocal(jnp.sum(p, axis=-1, keepdims=True), approx=True)

        o_h = jnp.einsum('bnm,bmd->bnd', p.astype(compute_dtype), v,
                         preferred_element_type=jnp.float32)  # (WB, N, hd)
        head_outs.append(o_h.reshape(m, head_dim).astype(compute_dtype))

    # merge heads back (column order = (head, head_dim), as in torch), bf16
    attn_out = jnp.concatenate(head_outs, axis=-1)            # (M, C)

    # ---- output projection -------------------------------------------------
    y = jnp.dot(attn_out, wproj_ref[...],
                preferred_element_type=jnp.float32)           # (M, C_out_pad)
    y = y + bproj_ref[...]
    o_ref[...] = y.reshape(wb, n_p, -1).astype(o_ref.dtype)


def _pick_window_batch(b_, n_p, c, c_in_p, c_seg_p, c_out_p,
                       compute_itemsize, out_itemsize,
                       budget, min_steps, weight_bufs):
    # Target ~512 rows per tile (fills the MXU M dim, amortizes step overhead).
    target_rows = 512
    wb = max(1, min(b_, pl.cdiv(target_rows, n_p)))

    # Keep >= min_steps grid steps when there is enough work (megacore / v7x
    # dual TC), but never shrink tiles below ~128 rows to do so.
    if b_ >= min_steps and pl.cdiv(b_, wb) < min_steps:
        wb_steps = pl.cdiv(b_, min_steps)
        if wb_steps * n_p >= 128:
            wb = wb_steps

    def vmem_bytes(wb_):
        m = wb_ * n_p
        tiles = (2 * m * c_in_p * compute_itemsize          # x (double-buffered)
                 + 2 * m * c_out_p * out_itemsize)          # out (double-buffered)
        weights = weight_bufs * (
            (c_in_p * 3 * c_seg_p + c * c_out_p) * compute_itemsize
            + (3 * c_seg_p + c_out_p) * 4)                  # biases (f32)
        inter = (m * 3 * c_seg_p * (4 + compute_itemsize)   # qkv f32 acc + bf16 copy
                 + 2 * 2 * wb_ * n_p * n_p * 4              # ~2 heads of s/p live
                 + m * c * compute_itemsize                 # merged heads (bf16)
                 + m * c_out_p * 4)                         # proj f32 accumulator
        return tiles + weights + inter

    while wb > 1 and vmem_bytes(wb) > budget:
        wb = max(1, wb // 2)
    return wb


def window_attention(x, wqkv, bqkv, wproj, bproj, *, num_heads,
                     compute_dtype=jnp.bfloat16, out_dtype=None):
    """x: (B_, N, C); wqkv: (C, 3C); bqkv: (3C,); wproj: (C, C); bproj: (C,)."""
    b_, n, c = x.shape
    assert c % num_heads == 0, "dim must be divisible by num_heads"
    head_dim = c // num_heads
    scale = head_dim ** (-0.5)
    out_dtype = x.dtype if out_dtype is None else out_dtype

    vmem_limit, budget, min_steps = _vmem_policy()

    # Lane-dense padding of the channel dims (zeros -> math unchanged), and
    # sublane-aligned N (padded keys are masked out before softmax).
    c_in_p = _round_up(c, 128)
    c_seg_p = _round_up(c, 128)      # per-segment (Q / K / V) qkv column pad
    c_out_p = _round_up(c, 128)
    n_p = _round_up(n, 8)

    compute_itemsize = jnp.dtype(compute_dtype).itemsize
    out_itemsize = jnp.dtype(out_dtype).itemsize

    # ---- prepare weights once (not per grid step) --------------------------
    # qkv weight: segment-padded (Q|K|V each c_seg_p cols); scale folded into Q.
    wq, wk, wv = wqkv[:, :c], wqkv[:, c:2 * c], wqkv[:, 2 * c:]
    wqkv_p = jnp.zeros((c_in_p, 3 * c_seg_p), compute_dtype)
    wqkv_p = wqkv_p.at[:c, 0:c].set((wq * scale).astype(compute_dtype))
    wqkv_p = wqkv_p.at[:c, c_seg_p:c_seg_p + c].set(wk.astype(compute_dtype))
    wqkv_p = wqkv_p.at[:c, 2 * c_seg_p:2 * c_seg_p + c].set(wv.astype(compute_dtype))

    bqkv_f32 = bqkv.astype(jnp.float32)
    bqkv_p = jnp.zeros((1, 3 * c_seg_p), jnp.float32)
    bqkv_p = bqkv_p.at[0, 0:c].set(bqkv_f32[:c] * scale)
    bqkv_p = bqkv_p.at[0, c_seg_p:c_seg_p + c].set(bqkv_f32[c:2 * c])
    bqkv_p = bqkv_p.at[0, 2 * c_seg_p:2 * c_seg_p + c].set(bqkv_f32[2 * c:])

    wproj_p = _pad_to(wproj, (c, c_out_p), compute_dtype)    # zero cols >= C
    bproj_p = _pad_to(bproj.reshape(1, c), (1, c_out_p), jnp.float32)

    kernel = functools.partial(_window_attn_kernel,
                               num_heads=num_heads, head_dim=head_dim,
                               seg=c_seg_p, n_real=n)

    def _run(weights_single_buffered):
        weight_bufs = 1 if weights_single_buffered else 2
        wb = _pick_window_batch(b_, n_p, c, c_in_p, c_seg_p, c_out_p,
                                compute_itemsize, out_itemsize,
                                budget, min_steps, weight_bufs)
        b_p = _round_up(b_, wb)
        x_p = _pad_to(x, (b_p, n_p, c_in_p), compute_dtype)

        # Resident operands (constant index maps): no point double-buffering.
        w_kwargs = ({"pipeline_mode": pl.Buffered(1)}
                    if weights_single_buffered else {})

        return pl.pallas_call(
            kernel,
            out_shape=jax.ShapeDtypeStruct((b_p, n_p, c_out_p), out_dtype),
            grid_spec=pltpu.PrefetchScalarGridSpec(
                num_scalar_prefetch=0,
                grid=(b_p // wb,),
                in_specs=[
                    pl.BlockSpec((wb, n_p, c_in_p), lambda i: (i, 0, 0)),
                    pl.BlockSpec((c_in_p, 3 * c_seg_p), lambda i: (0, 0), **w_kwargs),
                    pl.BlockSpec((1, 3 * c_seg_p), lambda i: (0, 0), **w_kwargs),
                    pl.BlockSpec((c, c_out_p), lambda i: (0, 0), **w_kwargs),
                    pl.BlockSpec((1, c_out_p), lambda i: (0, 0), **w_kwargs),
                ],
                out_specs=pl.BlockSpec((wb, n_p, c_out_p), lambda i: (i, 0, 0)),
            ),
            compiler_params=pltpu.CompilerParams(
                dimension_semantics=("parallel",),
                vmem_limit_bytes=vmem_limit),
        )(x_p, wqkv_p, bqkv_p, wproj_p, bproj_p)

    try:
        out = _run(True)
    except Exception:
        # Fallback if this JAX build rejects single-buffered pipeline_mode.
        out = _run(False)

    return out[:b_, :n, :c]


def _reference(x, wqkv, bqkv, wproj, bproj, num_heads):
    # Pure-JAX (f32) mirror of the PyTorch forward.
    b_, n, c = x.shape
    hd = c // num_heads
    scale = hd ** (-0.5)
    qkv = (x @ wqkv + bqkv).reshape(b_, n, 3, num_heads, hd).transpose(2, 0, 3, 1, 4)
    q, k, v = qkv[0], qkv[1], qkv[2]
    q = q * scale
    attn = q @ jnp.swapaxes(k, -2, -1)
    attn = jax.nn.softmax(attn, axis=-1)
    out = (attn @ v).transpose(0, 2, 1, 3).reshape(b_, n, c)
    return out @ wproj + bproj


if __name__ == "__main__":
    # Small, module-consistent shapes: dim=32, window 4x4 -> N=16, heads=4.
    B_, dim, num_heads = 2, 32, 4
    window_size = (4, 4)
    N = window_size[0] * window_size[1]

    key = jax.random.PRNGKey(0)
    kx, k1, k2, k3, k4 = jax.random.split(key, 5)

    x = jax.random.normal(kx, (B_, N, dim), dtype=jnp.float32)
    wqkv = 0.02 * jax.random.normal(k1, (dim, 3 * dim), dtype=jnp.float32)
    bqkv = 0.02 * jax.random.normal(k2, (3 * dim,), dtype=jnp.float32)
    wproj = 0.02 * jax.random.normal(k3, (dim, dim), dtype=jnp.float32)
    bproj = 0.02 * jax.random.normal(k4, (dim,), dtype=jnp.float32)

    out = window_attention(x, wqkv, bqkv, wproj, bproj, num_heads=num_heads)
    out = jax.block_until_ready(out)

    ref = _reference(x, wqkv, bqkv, wproj, bproj, num_heads)
    assert out.shape == (B_, N, dim)
    # bf16 matmul operands + approx reciprocal -> compare against the f32
    # reference with a bf16-level tolerance.
    assert jnp.allclose(out, ref, atol=5e-2, rtol=5e-2), "mismatch vs reference"

    print("KERNEL_OK")
</pallas_src>

<mosaic_0001>
module attributes {stable_mosaic.version = 11 : i64} {
  func.func @_window_attn_kernel(%arg0: i32, %arg1: memref<2x16x128xbf16, #tpu.memory_space<vmem>>, %arg2: memref<128x384xbf16, #tpu.memory_space<vmem>>, %arg3: memref<1x384xf32, #tpu.memory_space<vmem>>, %arg4: memref<32x128xbf16, #tpu.memory_space<vmem>>, %arg5: memref<1x128xf32, #tpu.memory_space<vmem>>, %arg6: memref<2x16x128xf32, #tpu.memory_space<vmem>>) attributes {dimension_semantics = [#tpu.dimension_semantics<parallel>], iteration_bounds = array<i64: 1>, scalar_prefetch = 0 : i64, scratch_operands = 0 : i64, tpu.core_type = #tpu.core_type<tc>, window_params = [{transform_indices = @transform_0, window_bounds = array<i64: 2, 16, 128>}, {pipeline_mode = #tpu.pipeline_mode<synchronous>, transform_indices = @transform_1, window_bounds = array<i64: 128, 384>}, {pipeline_mode = #tpu.pipeline_mode<synchronous>, transform_indices = @transform_2, window_bounds = array<i64: 1, 384>}, {pipeline_mode = #tpu.pipeline_mode<synchronous>, transform_indices = @transform_3, window_bounds = array<i64: 32, 128>}, {pipeline_mode = #tpu.pipeline_mode<synchronous>, transform_indices = @transform_4, window_bounds = array<i64: 1, 128>}, {transform_indices = @transform_5, window_bounds = array<i64: 2, 16, 128>}]} {
    %c0 = arith.constant 0 : index
    %c0_0 = arith.constant 0 : index
    %c0_1 = arith.constant 0 : index
    %0 = vector.load %arg1[%c0, %c0_0, %c0_1] : memref<2x16x128xbf16, #tpu.memory_space<vmem>>, vector<2x16x128xbf16>
    %1 = vector.shape_cast %0 : vector<2x16x128xbf16> to vector<32x128xbf16>
    %c0_2 = arith.constant 0 : index
    %c0_3 = arith.constant 0 : index
    %2 = vector.load %arg2[%c0_2, %c0_3] : memref<128x384xbf16, #tpu.memory_space<vmem>>, vector<128x384xbf16>
    %cst = arith.constant dense<0.000000e+00> : vector<32x384xf32>
    %3 = tpu.matmul %1, %2, %cst {dimension_numbers = #tpu.dot_dimension_numbers<[1], [0], [0], [1], [0, 0, 1, 1], [], []>} : vector<32x128xbf16>, vector<128x384xbf16>, vector<32x384xf32> -> vector<32x384xf32>
    %c0_4 = arith.constant 0 : index
    %c0_5 = arith.constant 0 : index
    %4 = vector.load %arg3[%c0_4, %c0_5] : memref<1x384xf32, #tpu.memory_space<vmem>>, vector<1x384xf32>
    %5 = vector.broadcast %4 : vector<1x384xf32> to vector<32x384xf32>
    %6 = arith.addf %3, %5 : vector<32x384xf32>
    %7 = arith.truncf %6 : vector<32x384xf32> to vector<32x384xbf16>
    %8 = vector.extract_strided_slice %7 {offsets = [0, 0], sizes = [32, 8], strides = [1, 1]} : vector<32x384xbf16> to vector<32x8xbf16>
    %9 = vector.shape_cast %8 : vector<32x8xbf16> to vector<2x16x8xbf16>
    %10 = vector.extract_strided_slice %7 {offsets = [0, 128], sizes = [32, 8], strides = [1, 1]} : vector<32x384xbf16> to vector<32x8xbf16>
    %11 = vector.shape_cast %10 : vector<32x8xbf16> to vector<2x16x8xbf16>
    %12 = vector.extract_strided_slice %7 {offsets = [0, 256], sizes = [32, 8], strides = [1, 1]} : vector<32x384xbf16> to vector<32x8xbf16>
    %13 = vector.shape_cast %12 : vector<32x8xbf16> to vector<2x16x8xbf16>
    "tpu.trace_start"() <{level = 10 : i32, message = "bnd,bmd->bnm"}> : () -> ()
    %cst_6 = arith.constant dense<0.000000e+00> : vector<2x16x16xf32>
    %14 = tpu.matmul %9, %11, %cst_6 {dimension_numbers = #tpu.dot_dimension_numbers<[2], [2], [1], [1], [0, 0, 0, 1, 1, 1], [0], [0]>} : vector<2x16x8xbf16>, vector<2x16x8xbf16>, vector<2x16x16xf32> -> vector<2x16x16xf32>
    "tpu.trace_stop"() : () -> ()
    %cst_7 = arith.constant dense<0xFF800000> : vector<2x16xf32>
    %15 = vector.multi_reduction <maximumf>, %14, %cst_7 [2] : vector<2x16x16xf32> to vector<2x16xf32>
    %16 = vector.shape_cast %15 : vector<2x16xf32> to vector<2x16x1xf32>
    %17 = vector.broadcast %16 : vector<2x16x1xf32> to vector<2x16x16xf32>
    %18 = arith.subf %14, %17 : vector<2x16x16xf32>
    %19 = math.exp %18 : vector<2x16x16xf32>
    %cst_8 = arith.constant dense<0.000000e+00> : vector<2x16xf32>
    %20 = vector.multi_reduction <add>, %19, %cst_8 [2] : vector<2x16x16xf32> to vector<2x16xf32>
    %21 = vector.shape_cast %20 : vector<2x16xf32> to vector<2x16x1xf32>
    %22 = tpu.reciprocal %21 {approx = true} : vector<2x16x1xf32> -> vector<2x16x1xf32>
    %23 = vector.broadcast %22 : vector<2x16x1xf32> to vector<2x16x16xf32>
    %24 = arith.mulf %19, %23 : vector<2x16x16xf32>
    %25 = arith.truncf %24 : vector<2x16x16xf32> to vector<2x16x16xbf16>
    "tpu.trace_start"() <{level = 10 : i32, message = "bnm,bmd->bnd"}> : () -> ()
    %cst_9 = arith.constant dense<0.000000e+00> : vector<2x16x8xf32>
    %26 = tpu.matmul %25, %13, %cst_9 {dimension_numbers = #tpu.dot_dimension_numbers<[2], [1], [1], [2], [0, 0, 0, 1, 1, 2], [0], [0]>} : vector<2x16x16xbf16>, vector<2x16x8xbf16>, vector<2x16x8xf32> -> vector<2x16x8xf32>
    "tpu.trace_stop"() : () -> ()
    %27 = vector.shape_cast %26 : vector<2x16x8xf32> to vector<32x8xf32>
    %28 = arith.truncf %27 : vector<32x8xf32> to vector<32x8xbf16>
    %29 = vector.extract_strided_slice %7 {offsets = [0, 8], sizes = [32, 8], strides = [1, 1]} : vector<32x384xbf16> to vector<32x8xbf16>
    %30 = vector.shape_cast %29 : vector<32x8xbf16> to vector<2x16x8xbf16>
    %31 = vector.extract_strided_slice %7 {offsets = [0, 136], sizes = [32, 8], strides = [1, 1]} : vector<32x384xbf16> to vector<32x8xbf16>
    %32 = vector.shape_cast %31 : vector<32x8xbf16> to vector<2x16x8xbf16>
    %33 = vector.extract_strided_slice %7 {offsets = [0, 264], sizes = [32, 8], strides = [1, 1]} : vector<32x384xbf16> to vector<32x8xbf16>
    %34 = vector.shape_cast %33 : vector<32x8xbf16> to vector<2x16x8xbf16>
    "tpu.trace_start"() <{level = 10 : i32, message = "bnd,bmd->bnm"}> : () -> ()
    %cst_10 = arith.constant dense<0.000000e+00> : vector<2x16x16xf32>
    %35 = tpu.matmul %30, %32, %cst_10 {dimension_numbers = #tpu.dot_dimension_numbers<[2], [2], [1], [1], [0, 0, 0, 1, 1, 1], [0], [0]>} : vector<2x16x8xbf16>, vector<2x16x8xbf16>, vector<2x16x16xf32> -> vector<2x16x16xf32>
    "tpu.trace_stop"() : () -> ()
    %cst_11 = arith.constant dense<0xFF800000> : vector<2x16xf32>
    %36 = vector.multi_reduction <maximumf>, %35, %cst_11 [2] : vector<2x16x16xf32> to vector<2x16xf32>
    %37 = vector.shape_cast %36 : vector<2x16xf32> to vector<2x16x1xf32>
    %38 = vector.broadcast %37 : vector<2x16x1xf32> to vector<2x16x16xf32>
    %39 = arith.subf %35, %38 : vector<2x16x16xf32>
    %40 = math.exp %39 : vector<2x16x16xf32>
    %cst_12 = arith.constant dense<0.000000e+00> : vector<2x16xf32>
    %41 = vector.multi_reduction <add>, %40, %cst_12 [2] : vector<2x16x16xf32> to vector<2x16xf32>
    %42 = vector.shape_cast %41 : vector<2x16xf32> to vector<2x16x1xf32>
    %43 = tpu.reciprocal %42 {approx = true} : vector<2x16x1xf32> -> vector<2x16x1xf32>
    %44 = vector.broadcast %43 : vector<2x16x1xf32> to vector<2x16x16xf32>
    %45 = arith.mulf %40, %44 : vector<2x16x16xf32>
    %46 = arith.truncf %45 : vector<2x16x16xf32> to vector<2x16x16xbf16>
    "tpu.trace_start"() <{level = 10 : i32, message = "bnm,bmd->bnd"}> : () -> ()
    %cst_13 = arith.constant dense<0.000000e+00> : vector<2x16x8xf32>
    %47 = tpu.matmul %46, %34, %cst_13 {dimension_numbers = #tpu.dot_dimension_numbers<[2], [1], [1], [2], [0, 0, 0, 1, 1, 2], [0], [0]>} : vector<2x16x16xbf16>, vector<2x16x8xbf16>, vector<2x16x8xf32> -> vector<2x16x8xf32>
    "tpu.trace_stop"() : () -> ()
    %48 = vector.shape_cast %47 : vector<2x16x8xf32> to vector<32x8xf32>
    %49 = arith.truncf %48 : vector<32x8xf32> to vector<32x8xbf16>
    %50 = vector.extract_strided_slice %7 {offsets = [0, 16], sizes = [32, 8], strides = [1, 1]} : vector<32x384xbf16> to vector<32x8xbf16>
    %51 = vector.shape_cast %50 : vector<32x8xbf16> to vector<2x16x8xbf16>
    %52 = vector.extract_strided_slice %7 {offsets = [0, 144], sizes = [32, 8], strides = [1, 1]} : vector<32x384xbf16> to vector<32x8xbf16>
    %53 = vector.shape_cast %52 : vector<32x8xbf16> to vector<2x16x8xbf16>
    %54 = vector.extract_strided_slice %7 {offsets = [0, 272], sizes = [32, 8], strides = [1, 1]} : vector<32x384xbf16> to vector<32x8xbf16>
    %55 = vector.shape_cast %54 : vector<32x8xbf16> to vector<2x16x8xbf16>
    "tpu.trace_start"() <{level = 10 : i32, message = "bnd,bmd->bnm"}> : () -> ()
    %cst_14 = arith.constant dense<0.000000e+00> : vector<2x16x16xf32>
    %56 = tpu.matmul %51, %53, %cst_14 {dimension_numbers = #tpu.dot_dimension_numbers<[2], [2], [1], [1], [0, 0, 0, 1, 1, 1], [0], [0]>} : vector<2x16x8xbf16>, vector<2x16x8xbf16>, vector<2x16x16xf32> -> vector<2x16x16xf32>
    "tpu.trace_stop"() : () -> ()
    %cst_15 = arith.constant dense<0xFF800000> : vector<2x16xf32>
    %57 = vector.multi_reduction <maximumf>, %56, %cst_15 [2] : vector<2x16x16xf32> to vector<2x16xf32>
    %58 = vector.shape_cast %57 : vector<2x16xf32> to vector<2x16x1xf32>
    %59 = vector.broadcast %58 : vector<2x16x1xf32> to vector<2x16x16xf32>
    %60 = arith.subf %56, %59 : vector<2x16x16xf32>
    %61 = math.exp %60 : vector<2x16x16xf32>
    %cst_16 = arith.constant dense<0.000000e+00> : vector<2x16xf32>
    %62 = vector.multi_reduction <add>, %61, %cst_16 [2] : vector<2x16x16xf32> to vector<2x16xf32>
    %63 = vector.shape_cast %62 : vector<2x16xf32> to vector<2x16x1xf32>
    %64 = tpu.reciprocal %63 {approx = true} : vector<2x16x1xf32> -> vector<2x16x1xf32>
    %65 = vector.broadcast %64 : vector<2x16x1xf32> to vector<2x16x16xf32>
    %66 = arith.mulf %61, %65 : vector<2x16x16xf32>
    %67 = arith.truncf %66 : vector<2x16x16xf32> to vector<2x16x16xbf16>
    "tpu.trace_start"() <{level = 10 : i32, message = "bnm,bmd->bnd"}> : () -> ()
    %cst_17 = arith.constant dense<0.000000e+00> : vector<2x16x8xf32>
    %68 = tpu.matmul %67, %55, %cst_17 {dimension_numbers = #tpu.dot_dimension_numbers<[2], [1], [1], [2], [0, 0, 0, 1, 1, 2], [0], [0]>} : vector<2x16x16xbf16>, vector<2x16x8xbf16>, vector<2x16x8xf32> -> vector<2x16x8xf32>
    "tpu.trace_stop"() : () -> ()
    %69 = vector.shape_cast %68 : vector<2x16x8xf32> to vector<32x8xf32>
    %70 = arith.truncf %69 : vector<32x8xf32> to vector<32x8xbf16>
    %71 = vector.extract_strided_slice %7 {offsets = [0, 24], sizes = [32, 8], strides = [1, 1]} : vector<32x384xbf16> to vector<32x8xbf16>
    %72 = vector.shape_cast %71 : vector<32x8xbf16> to vector<2x16x8xbf16>
    %73 = vector.extract_strided_slice %7 {offsets = [0, 152], sizes = [32, 8], strides = [1, 1]} : vector<32x384xbf16> to vector<32x8xbf16>
    %74 = vector.shape_cast %73 : vector<32x8xbf16> to vector<2x16x8xbf16>
    %75 = vector.extract_strided_slice %7 {offsets = [0, 280], sizes = [32, 8], strides = [1, 1]} : vector<32x384xbf16> to vector<32x8xbf16>
    %76 = vector.shape_cast %75 : vector<32x8xbf16> to vector<2x16x8xbf16>
    "tpu.trace_start"() <{level = 10 : i32, message = "bnd,bmd->bnm"}> : () -> ()
    %cst_18 = arith.constant dense<0.000000e+00> : vector<2x16x16xf32>
    %77 = tpu.matmul %72, %74, %cst_18 {dimension_numbers = #tpu.dot_dimension_numbers<[2], [2], [1], [1], [0, 0, 0, 1, 1, 1], [0], [0]>} : vector<2x16x8xbf16>, vector<2x16x8xbf16>, vector<2x16x16xf32> -> vector<2x16x16xf32>
    "tpu.trace_stop"() : () -> ()
    %cst_19 = arith.constant dense<0xFF800000> : vector<2x16xf32>
    %78 = vector.multi_reduction <maximumf>, %77, %cst_19 [2] : vector<2x16x16xf32> to vector<2x16xf32>
    %79 = vector.shape_cast %78 : vector<2x16xf32> to vector<2x16x1xf32>
    %80 = vector.broadcast %79 : vector<2x16x1xf32> to vector<2x16x16xf32>
    %81 = arith.subf %77, %80 : vector<2x16x16xf32>
    %82 = math.exp %81 : vector<2x16x16xf32>
    %cst_20 = arith.constant dense<0.000000e+00> : vector<2x16xf32>
    %83 = vector.multi_reduction <add>, %82, %cst_20 [2] : vector<2x16x16xf32> to vector<2x16xf32>
    %84 = vector.shape_cast %83 : vector<2x16xf32> to vector<2x16x1xf32>
    %85 = tpu.reciprocal %84 {approx = true} : vector<2x16x1xf32> -> vector<2x16x1xf32>
    %86 = vector.broadcast %85 : vector<2x16x1xf32> to vector<2x16x16xf32>
    %87 = arith.mulf %82, %86 : vector<2x16x16xf32>
    %88 = arith.truncf %87 : vector<2x16x16xf32> to vector<2x16x16xbf16>
    "tpu.trace_start"() <{level = 10 : i32, message = "bnm,bmd->bnd"}> : () -> ()
    %cst_21 = arith.constant dense<0.000000e+00> : vector<2x16x8xf32>
    %89 = tpu.matmul %88, %76, %cst_21 {dimension_numbers = #tpu.dot_dimension_numbers<[2], [1], [1], [2], [0, 0, 0, 1, 1, 2], [0], [0]>} : vector<2x16x16xbf16>, vector<2x16x8xbf16>, vector<2x16x8xf32> -> vector<2x16x8xf32>
    "tpu.trace_stop"() : () -> ()
    %90 = vector.shape_cast %89 : vector<2x16x8xf32> to vector<32x8xf32>
    %91 = arith.truncf %90 : vector<32x8xf32> to vector<32x8xbf16>
    %92 = tpu.concatenate %28, %49, %70, %91 in 1 : vector<32x8xbf16>, vector<32x8xbf16>, vector<32x8xbf16>, vector<32x8xbf16> -> vector<32x32xbf16>
    %c0_22 = arith.constant 0 : index
    %c0_23 = arith.constant 0 : index
    %93 = vector.load %arg4[%c0_22, %c0_23] : memref<32x128xbf16, #tpu.memory_space<vmem>>, vector<32x128xbf16>
    %cst_24 = arith.constant dense<0.000000e+00> : vector<32x128xf32>
    %94 = tpu.matmul %92, %93, %cst_24 {dimension_numbers = #tpu.dot_dimension_numbers<[1], [0], [0], [1], [0, 0, 1, 1], [], []>} : vector<32x32xbf16>, vector<32x128xbf16>, vector<32x128xf32> -> vector<32x128xf32>
    %c0_25 = arith.constant 0 : index
    %c0_26 = arith.constant 0 : index
    %95 = vector.load %arg5[%c0_25, %c0_26] : memref<1x128xf32, #tpu.memory_space<vmem>>, vector<1x128xf32>
    %96 = vector.broadcast %95 : vector<1x128xf32> to vector<32x128xf32>
    %97 = arith.addf %94, %96 : vector<32x128xf32>
    %98 = vector.shape_cast %97 : vector<32x128xf32> to vector<2x16x128xf32>
    %c0_27 = arith.constant 0 : index
    %c0_28 = arith.constant 0 : index
    %c0_29 = arith.constant 0 : index
    %99 = vector.load %arg6[%c0_27, %c0_28, %c0_29] : memref<2x16x128xf32, #tpu.memory_space<vmem>>, vector<2x16x128xf32>
    tpu.vector_store %arg6[%c0_27, %c0_28, %c0_29], %98 {strides = array<i32>} : memref<2x16x128xf32, #tpu.memory_space<vmem>>, vector<2x16x128xf32>,
    return
  }
  func.func @transform_0(%arg0: i32) -> (i32, i32, i32) {
    %c0_i32 = arith.constant 0 : i32
    %c0_i32_0 = arith.constant 0 : i32
    %c0_i32_1 = arith.constant 0 : i32
    return %arg0, %c0_i32, %c0_i32_0 : i32, i32, i32
  }
  func.func @transform_1(%arg0: i32) -> (i32, i32) {
    %c0_i32 = arith.constant 0 : i32
    %c0_i32_0 = arith.constant 0 : i32
    %c0_i32_1 = arith.constant 0 : i32
    return %c0_i32, %c0_i32_0 : i32, i32
  }
  func.func @transform_2(%arg0: i32) -> (i32, i32) {
    %c0_i32 = arith.constant 0 : i32
    %c0_i32_0 = arith.constant 0 : i32
    %c0_i32_1 = arith.constant 0 : i32
    return %c0_i32, %c0_i32_0 : i32, i32
  }
  func.func @transform_3(%arg0: i32) -> (i32, i32) {
    %c0_i32 = arith.constant 0 : i32
    %c0_i32_0 = arith.constant 0 : i32
    %c0_i32_1 = arith.constant 0 : i32
    return %c0_i32, %c0_i32_0 : i32, i32
  }
  func.func @transform_4(%arg0: i32) -> (i32, i32) {
    %c0_i32 = arith.constant 0 : i32
    %c0_i32_0 = arith.constant 0 : i32
    %c0_i32_1 = arith.constant 0 : i32
    return %c0_i32, %c0_i32_0 : i32, i32
  }
  func.func @transform_5(%arg0: i32) -> (i32, i32, i32) {
    %c0_i32 = arith.constant 0 : i32
    %c0_i32_0 = arith.constant 0 : i32
    %c0_i32_1 = arith.constant 0 : i32
    return %arg0, %c0_i32, %c0_i32_0 : i32, i32, i32
  }
}

module attributes {stable_mosaic.version = 11 : i64} {
  func.func @_window_attn_kernel(%arg0: i32, %arg1: memref<2x16x128xbf16, #tpu.memory_space<vmem>>, %arg2: memref<128x384xbf16, #tpu.memory_space<vmem>>, %arg3: memref<1x384xf32, #tpu.memory_space<vmem>>, %arg4: memref<32x128xbf16, #tpu.memory_space<vmem>>, %arg5: memref<1x128xf32, #tpu.memory_space<vmem>>, %arg6: memref<2x16x128xf32, #tpu.memory_space<vmem>>) attributes {dimension_semantics = [#tpu.dimension_semantics<parallel>], iteration_bounds = array<i64: 1>, scalar_prefetch = 0 : i64, scratch_operands = 0 : i64, tpu.core_type = #tpu.core_type<tc>, window_params = [{transform_indices = @transform_0, window_bounds = array<i64: 2, 16, 128>}, {pipeline_mode = #tpu.pipeline_mode<synchronous>, transform_indices = @transform_1, window_bounds = array<i64: 128, 384>}, {pipeline_mode = #tpu.pipeline_mode<synchronous>, transform_indices = @transform_2, window_bounds = array<i64: 1, 384>}, {pipeline_mode = #tpu.pipeline_mode<synchronous>, transform_indices = @transform_3, window_bounds = array<i64: 32, 128>}, {pipeline_mode = #tpu.pipeline_mode<synchronous>, transform_indices = @transform_4, window_bounds = array<i64: 1, 128>}, {transform_indices = @transform_5, window_bounds = array<i64: 2, 16, 128>}]} {
    %c0 = arith.constant 0 : index
    %c0_0 = arith.constant 0 : index
    %c0_1 = arith.constant 0 : index
    %0 = vector.load %arg1[%c0, %c0_0, %c0_1] : memref<2x16x128xbf16, #tpu.memory_space<vmem>>, vector<2x16x128xbf16>
    %1 = vector.shape_cast %0 : vector<2x16x128xbf16> to vector<32x128xbf16>
    %c0_2 = arith.constant 0 : index
    %c0_3 = arith.constant 0 : index
    %2 = vector.load %arg2[%c0_2, %c0_3] : memref<128x384xbf16, #tpu.memory_space<vmem>>, vector<128x384xbf16>
    %cst = arith.constant dense<0.000000e+00> : vector<32x384xf32>
    %3 = tpu.matmul %1, %2, %cst {dimension_numbers = #tpu.dot_dimension_numbers<[1], [0], [0], [1], [0, 0, 1, 1], [], []>} : vector<32x128xbf16>, vector<128x384xbf16>, vector<32x384xf32> -> vector<32x384xf32>
    %c0_4 = arith.constant 0 : index
    %c0_5 = arith.constant 0 : index
    %4 = vector.load %arg3[%c0_4, %c0_5] : memref<1x384xf32, #tpu.memory_space<vmem>>, vector<1x384xf32>
    %5 = vector.broadcast %4 : vector<1x384xf32> to vector<32x384xf32>
    %6 = arith.addf %3, %5 : vector<32x384xf32>
    %7 = arith.truncf %6 : vector<32x384xf32> to vector<32x384xbf16>
    %8 = vector.extract_strided_slice %7 {offsets = [0, 0], sizes = [32, 8], strides = [1, 1]} : vector<32x384xbf16> to vector<32x8xbf16>
    %9 = vector.shape_cast %8 : vector<32x8xbf16> to vector<2x16x8xbf16>
    %10 = vector.extract_strided_slice %7 {offsets = [0, 128], sizes = [32, 8], strides = [1, 1]} : vector<32x384xbf16> to vector<32x8xbf16>
    %11 = vector.shape_cast %10 : vector<32x8xbf16> to vector<2x16x8xbf16>
    %12 = vector.extract_strided_slice %7 {offsets = [0, 256], sizes = [32, 8], strides = [1, 1]} : vector<32x384xbf16> to vector<32x8xbf16>
    %13 = vector.shape_cast %12 : vector<32x8xbf16> to vector<2x16x8xbf16>
    "tpu.trace_start"() <{level = 10 : i32, message = "bnd,bmd->bnm"}> : () -> ()
    %cst_6 = arith.constant dense<0.000000e+00> : vector<2x16x16xf32>
    %14 = tpu.matmul %9, %11, %cst_6 {dimension_numbers = #tpu.dot_dimension_numbers<[2], [2], [1], [1], [0, 0, 0, 1, 1, 1], [0], [0]>} : vector<2x16x8xbf16>, vector<2x16x8xbf16>, vector<2x16x16xf32> -> vector<2x16x16xf32>
    "tpu.trace_stop"() : () -> ()
    %cst_7 = arith.constant dense<0xFF800000> : vector<2x16xf32>
    %15 = vector.multi_reduction <maximumf>, %14, %cst_7 [2] : vector<2x16x16xf32> to vector<2x16xf32>
    %16 = vector.shape_cast %15 : vector<2x16xf32> to vector<2x16x1xf32>
    %17 = vector.broadcast %16 : vector<2x16x1xf32> to vector<2x16x16xf32>
    %18 = arith.subf %14, %17 : vector<2x16x16xf32>
    %19 = math.exp %18 : vector<2x16x16xf32>
    %cst_8 = arith.constant dense<0.000000e+00> : vector<2x16xf32>
    %20 = vector.multi_reduction <add>, %19, %cst_8 [2] : vector<2x16x16xf32> to vector<2x16xf32>
    %21 = vector.shape_cast %20 : vector<2x16xf32> to vector<2x16x1xf32>
    %22 = tpu.reciprocal %21 {approx = true} : vector<2x16x1xf32> -> vector<2x16x1xf32>
    %23 = vector.broadcast %22 : vector<2x16x1xf32> to vector<2x16x16xf32>
    %24 = arith.mulf %19, %23 : vector<2x16x16xf32>
    %25 = arith.truncf %24 : vector<2x16x16xf32> to vector<2x16x16xbf16>
    "tpu.trace_start"() <{level = 10 : i32, message = "bnm,bmd->bnd"}> : () -> ()
    %cst_9 = arith.constant dense<0.000000e+00> : vector<2x16x8xf32>
    %26 = tpu.matmul %25, %13, %cst_9 {dimension_numbers = #tpu.dot_dimension_numbers<[2], [1], [1], [2], [0, 0, 0, 1, 1, 2], [0], [0]>} : vector<2x16x16xbf16>, vector<2x16x8xbf16>, vector<2x16x8xf32> -> vector<2x16x8xf32>
    "tpu.trace_stop"() : () -> ()
    %27 = vector.shape_cast %26 : vector<2x16x8xf32> to vector<32x8xf32>
    %28 = arith.truncf %27 : vector<32x8xf32> to vector<32x8xbf16>
    %29 = vector.extract_strided_slice %7 {offsets = [0, 8], sizes = [32, 8], strides = [1, 1]} : vector<32x384xbf16> to vector<32x8xbf16>
    %30 = vector.shape_cast %29 : vector<32x8xbf16> to vector<2x16x8xbf16>
    %31 = vector.extract_strided_slice %7 {offsets = [0, 136], sizes = [32, 8], strides = [1, 1]} : vector<32x384xbf16> to vector<32x8xbf16>
    %32 = vector.shape_cast %31 : vector<32x8xbf16> to vector<2x16x8xbf16>
    %33 = vector.extract_strided_slice %7 {offsets = [0, 264], sizes = [32, 8], strides = [1, 1]} : vector<32x384xbf16> to vector<32x8xbf16>
    %34 = vector.shape_cast %33 : vector<32x8xbf16> to vector<2x16x8xbf16>
    "tpu.trace_start"() <{level = 10 : i32, message = "bnd,bmd->bnm"}> : () -> ()
    %cst_10 = arith.constant dense<0.000000e+00> : vector<2x16x16xf32>
    %35 = tpu.matmul %30, %32, %cst_10 {dimension_numbers = #tpu.dot_dimension_numbers<[2], [2], [1], [1], [0, 0, 0, 1, 1, 1], [0], [0]>} : vector<2x16x8xbf16>, vector<2x16x8xbf16>, vector<2x16x16xf32> -> vector<2x16x16xf32>
    "tpu.trace_stop"() : () -> ()
    %cst_11 = arith.constant dense<0xFF800000> : vector<2x16xf32>
    %36 = vector.multi_reduction <maximumf>, %35, %cst_11 [2] : vector<2x16x16xf32> to vector<2x16xf32>
    %37 = vector.shape_cast %36 : vector<2x16xf32> to vector<2x16x1xf32>
    %38 = vector.broadcast %37 : vector<2x16x1xf32> to vector<2x16x16xf32>
    %39 = arith.subf %35, %38 : vector<2x16x16xf32>
    %40 = math.exp %39 : vector<2x16x16xf32>
    %cst_12 = arith.constant dense<0.000000e+00> : vector<2x16xf32>
    %41 = vector.multi_reduction <add>, %40, %cst_12 [2] : vector<2x16x16xf32> to vector<2x16xf32>
    %42 = vector.shape_cast %41 : vector<2x16xf32> to vector<2x16x1xf32>
    %43 = tpu.reciprocal %42 {approx = true} : vector<2x16x1xf32> -> vector<2x16x1xf32>
    %44 = vector.broadcast %43 : vector<2x16x1xf32> to vector<2x16x16xf32>
    %45 = arith.mulf %40, %44 : vector<2x16x16xf32>
    %46 = arith.truncf %45 : vector<2x16x16xf32> to vector<2x16x16xbf16>
    "tpu.trace_start"() <{level = 10 : i32, message = "bnm,bmd->bnd"}> : () -> ()
    %cst_13 = arith.constant dense<0.000000e+00> : vector<2x16x8xf32>
    %47 = tpu.matmul %46, %34, %cst_13 {dimension_numbers = #tpu.dot_dimension_numbers<[2], [1], [1], [2], [0, 0, 0, 1, 1, 2], [0], [0]>} : vector<2x16x16xbf16>, vector<2x16x8xbf16>, vector<2x16x8xf32> -> vector<2x16x8xf32>
    "tpu.trace_stop"() : () -> ()
    %48 = vector.shape_cast %47 : vector<2x16x8xf32> to vector<32x8xf32>
    %49 = arith.truncf %48 : vector<32x8xf32> to vector<32x8xbf16>
    %50 = vector.extract_strided_slice %7 {offsets = [0, 16], sizes = [32, 8], strides = [1, 1]} : vector<32x384xbf16> to vector<32x8xbf16>
    %51 = vector.shape_cast %50 : vector<32x8xbf16> to vector<2x16x8xbf16>
    %52 = vector.extract_strided_slice %7 {offsets = [0, 144], sizes = [32, 8], strides = [1, 1]} : vector<32x384xbf16> to vector<32x8xbf16>
    %53 = vector.shape_cast %52 : vector<32x8xbf16> to vector<2x16x8xbf16>
    %54 = vector.extract_strided_slice %7 {offsets = [0, 272], sizes = [32, 8], strides = [1, 1]} : vector<32x384xbf16> to vector<32x8xbf16>
    %55 = vector.shape_cast %54 : vector<32x8xbf16> to vector<2x16x8xbf16>
    "tpu.trace_start"() <{level = 10 : i32, message = "bnd,bmd->bnm"}> : () -> ()
    %cst_14 = arith.constant dense<0.000000e+00> : vector<2x16x16xf32>
    %56 = tpu.matmul %51, %53, %cst_14 {dimension_numbers = #tpu.dot_dimension_numbers<[2], [2], [1], [1], [0, 0, 0, 1, 1, 1], [0], [0]>} : vector<2x16x8xbf16>, vector<2x16x8xbf16>, vector<2x16x16xf32> -> vector<2x16x16xf32>
    "tpu.trace_stop"() : () -> ()
    %cst_15 = arith.constant dense<0xFF800000> : vector<2x16xf32>
    %57 = vector.multi_reduction <maximumf>, %56, %cst_15 [2] : vector<2x16x16xf32> to vector<2x16xf32>
    %58 = vector.shape_cast %57 : vector<2x16xf32> to vector<2x16x1xf32>
    %59 = vector.broadcast %58 : vector<2x16x1xf32> to vector<2x16x16xf32>
    %60 = arith.subf %56, %59 : vector<2x16x16xf32>
    %61 = math.exp %60 : vector<2x16x16xf32>
    %cst_16 = arith.constant dense<0.000000e+00> : vector<2x16xf32>
    %62 = vector.multi_reduction <add>, %61, %cst_16 [2] : vector<2x16x16xf32> to vector<2x16xf32>
    %63 = vector.shape_cast %62 : vector<2x16xf32> to vector<2x16x1xf32>
    %64 = tpu.reciprocal %63 {approx = true} : vector<2x16x1xf32> -> vector<2x16x1xf32>
    %65 = vector.broadcast %64 : vector<2x16x1xf32> to vector<2x16x16xf32>
    %66 = arith.mulf %61, %65 : vector<2x16x16xf32>
    %67 = arith.truncf %66 : vector<2x16x16xf32> to vector<2x16x16xbf16>
    "tpu.trace_start"() <{level = 10 : i32, message = "bnm,bmd->bnd"}> : () -> ()
    %cst_17 = arith.constant dense<0.000000e+00> : vector<2x16x8xf32>
    %68 = tpu.matmul %67, %55, %cst_17 {dimension_numbers = #tpu.dot_dimension_numbers<[2], [1], [1], [2], [0, 0, 0, 1, 1, 2], [0], [0]>} : vector<2x16x16xbf16>, vector<2x16x8xbf16>, vector<2x16x8xf32> -> vector<2x16x8xf32>
    "tpu.trace_stop"() : () -> ()
    %69 = vector.shape_cast %68 : vector<2x16x8xf32> to vector<32x8xf32>
    %70 = arith.truncf %69 : vector<32x8xf32> to vector<32x8xbf16>
    %71 = vector.extract_strided_slice %7 {offsets = [0, 24], sizes = [32, 8], strides = [1, 1]} : vector<32x384xbf16> to vector<32x8xbf16>
    %72 = vector.shape_cast %71 : vector<32x8xbf16> to vector<2x16x8xbf16>
    %73 = vector.extract_strided_slice %7 {offsets = [0, 152], sizes = [32, 8], strides = [1, 1]} : vector<32x384xbf16> to vector<32x8xbf16>
    %74 = vector.shape_cast %73 : vector<32x8xbf16> to vector<2x16x8xbf16>
    %75 = vector.extract_strided_slice %7 {offsets = [0, 280], sizes = [32, 8], strides = [1, 1]} : vector<32x384xbf16> to vector<32x8xbf16>
    %76 = vector.shape_cast %75 : vector<32x8xbf16> to vector<2x16x8xbf16>
    "tpu.trace_start"() <{level = 10 : i32, message = "bnd,bmd->bnm"}> : () -> ()
    %cst_18 = arith.constant dense<0.000000e+00> : vector<2x16x16xf32>
    %77 = tpu.matmul %72, %74, %cst_18 {dimension_numbers = #tpu.dot_dimension_numbers<[2], [2], [1], [1], [0, 0, 0, 1, 1, 1], [0], [0]>} : vector<2x16x8xbf16>, vector<2x16x8xbf16>, vector<2x16x16xf32> -> vector<2x16x16xf32>
    "tpu.trace_stop"() : () -> ()
    %cst_19 = arith.constant dense<0xFF800000> : vector<2x16xf32>
    %78 = vector.multi_reduction <maximumf>, %77, %cst_19 [2] : vector<2x16x16xf32> to vector<2x16xf32>
    %79 = vector.shape_cast %78 : vector<2x16xf32> to vector<2x16x1xf32>
    %80 = vector.broadcast %79 : vector<2x16x1xf32> to vector<2x16x16xf32>
    %81 = arith.subf %77, %80 : vector<2x16x16xf32>
    %82 = math.exp %81 : vector<2x16x16xf32>
    %cst_20 = arith.constant dense<0.000000e+00> : vector<2x16xf32>
    %83 = vector.multi_reduction <add>, %82, %cst_20 [2] : vector<2x16x16xf32> to vector<2x16xf32>
    %84 = vector.shape_cast %83 : vector<2x16xf32> to vector<2x16x1xf32>
    %85 = tpu.reciprocal %84 {approx = true} : vector<2x16x1xf32> -> vector<2x16x1xf32>
    %86 = vector.broadcast %85 : vector<2x16x1xf32> to vector<2x16x16xf32>
    %87 = arith.mulf %82, %86 : vector<2x16x16xf32>
    %88 = arith.truncf %87 : vector<2x16x16xf32> to vector<2x16x16xbf16>
    "tpu.trace_start"() <{level = 10 : i32, message = "bnm,bmd->bnd"}> : () -> ()
    %cst_21 = arith.constant dense<0.000000e+00> : vector<2x16x8xf32>
    %89 = tpu.matmul %88, %76, %cst_21 {dimension_numbers = #tpu.dot_dimension_numbers<[2], [1], [1], [2], [0, 0, 0, 1, 1, 2], [0], [0]>} : vector<2x16x16xbf16>, vector<2x16x8xbf16>, vector<2x16x8xf32> -> vector<2x16x8xf32>
    "tpu.trace_stop"() : () -> ()
    %90 = vector.shape_cast %89 : vector<2x16x8xf32> to vector<32x8xf32>
    %91 = arith.truncf %90 : vector<32x8xf32> to vector<32x8xbf16>
    %92 = tpu.concatenate %28, %49, %70, %91 in 1 : vector<32x8xbf16>, vector<32x8xbf16>, vector<32x8xbf16>, vector<32x8xbf16> -> vector<32x32xbf16>
    %c0_22 = arith.constant 0 : index
    %c0_23 = arith.constant 0 : index
    %93 = vector.load %arg4[%c0_22, %c0_23] : memref<32x128xbf16, #tpu.memory_space<vmem>>, vector<32x128xbf16>
    %cst_24 = arith.constant dense<0.000000e+00> : vector<32x128xf32>
    %94 = tpu.matmul %92, %93, %cst_24 {dimension_numbers = #tpu.dot_dimension_numbers<[1], [0], [0], [1], [0, 0, 1, 1], [], []>} : vector<32x32xbf16>, vector<32x128xbf16>, vector<32x128xf32> -> vector<32x128xf32>
    %c0_25 = arith.constant 0 : index
    %c0_26 = arith.constant 0 : index
    %95 = vector.load %arg5[%c0_25, %c0_26] : memref<1x128xf32, #tpu.memory_space<vmem>>, vector<1x128xf32>
    %96 = vector.broadcast %95 : vector<1x128xf32> to vector<32x128xf32>
    %97 = arith.addf %94, %96 : vector<32x128xf32>
    %98 = vector.shape_cast %97 : vector<32x128xf32> to vector<2x16x128xf32>
    %c0_27 = arith.constant 0 : index
    %c0_28 = arith.constant 0 : index
    %c0_29 = arith.constant 0 : index
    %99 = vector.load %arg6[%c0_27, %c0_28, %c0_29] : memref<2x16x128xf32, #tpu.memory_space<vmem>>, vector<2x16x128xf32>
    tpu.vector_store %arg6[%c0_27, %c0_28, %c0_29], %98 {strides = array<i32>} : memref<2x16x128xf32, #tpu.memory_space<vmem>>, vector<2x16x128xf32>,
    return
  }
  func.func @transform_0(%arg0: i32) -> (i32, i32, i32) {
    %c0_i32 = arith.constant 0 : i32
    %c0_i32_0 = arith.constant 0 : i32
    %c0_i32_1 = arith.constant 0 : i32
    return %arg0, %c0_i32, %c0_i32_0 : i32, i32, i32
  }
  func.func @transform_1(%arg0: i32) -> (i32, i32) {
    %c0_i32 = arith.constant 0 : i32
    %c0_i32_0 = arith.constant 0 : i32
    %c0_i32_1 = arith.constant 0 : i32
    return %c0_i32, %c0_i32_0 : i32, i32
  }
  func.func @transform_2(%arg0: i32) -> (i32, i32) {
    %c0_i32 = arith.constant 0 : i32
    %c0_i32_0 = arith.constant 0 : i32
    %c0_i32_1 = arith.constant 0 : i32
    return %c0_i32, %c0_i32_0 : i32, i32
  }
  func.func @transform_3(%arg0: i32) -> (i32, i32) {
    %c0_i32 = arith.constant 0 : i32
    %c0_i32_0 = arith.constant 0 : i32
    %c0_i32_1 = arith.constant 0 : i32
    return %c0_i32, %c0_i32_0 : i32, i32
  }
  func.func @transform_4(%arg0: i32) -> (i32, i32) {
    %c0_i32 = arith.constant 0 : i32
    %c0_i32_0 = arith.constant 0 : i32
    %c0_i32_1 = arith.constant 0 : i32
    return %c0_i32, %c0_i32_0 : i32, i32
  }
  func.func @transform_5(%arg0: i32) -> (i32, i32, i32) {
    %c0_i32 = arith.constant 0 : i32
    %c0_i32_0 = arith.constant 0 : i32
    %c0_i32_1 = arith.constant 0 : i32
    return %arg0, %c0_i32, %c0_i32_0 : i32, i32, i32
  }
}

</mosaic_0001>

<bundles_post_ra>
// kernel: tpu_custom_call.1
= control target key start
LH: loop header
LB: loop body
LE: loop exit
PB: predicated region body
PF: predicated region fallthrough
CT: control target
= control target key end

     0   :  { %10 = vsyncpa [#allocation3], 0  ;;  %s1801_s0 = inlined_call_operand.hbm [shape: bf16[2,16,128], index: 0, kind: input, shape index: {}]   ;;  %s1802_s1 = inlined_call_operand.hbm [shape: bf16[128,384], index: 1, kind: input, shape index: {}]   ;;  %s1803_s2 = inlined_call_operand.hbm [shape: f32[1,384], index: 2, kind: input, shape index: {}]   ;;  %s1804_s3 = inlined_call_operand.hbm [shape: bf16[32,128], index: 3, kind: input, shape index: {}]   ;;  %s1805_s4 = inlined_call_operand.vmem [shape: f32[1,128], index: 4, kind: input, shape index: {}]   ;;  %s1806_s5 = inlined_call_operand.hbm [shape: f32[2,16,128], index: 5, kind: output, shape index: {}]  }
   0x1   :  { %11 = vsyncpa [#allocation6], 0 }
   0x2   :  { %12 = vsyncpa [#allocation9], 0  ;;  %s31_s20 = sshll.u32 %s1802_s1, 4  ;;  %s32_s20 = int_to_ptr.hbm [resolvable:$true] %s31_s20 }
   0x3   :  { %13 = vsyncpa [#allocation4], 0  ;;  %s1497_s21 = smov [#allocation5]   ;;  %s18_s25 = sshll.u32 %s1801_s0, 4  ;;  %s19_s25 = int_to_ptr.hbm [resolvable:$true] %s18_s25 }
   0x4   :  { %s33_s22 = sshll.u32 %s1497_s21, 4  ;;  %s1498_s26 = smov 192   ;;  %s34_s22 = int_to_ptr.vmem [resolvable:$true] %s33_s22 }
   0x5   :  { %s1499_s27 = smov 12   ;;  %s1500_s28 = smov [#allocation2]  }
   0x6   :  { %39 = dma.hbm_to_vmem [thread:$0]  %s32_s20, 3072, %s34_s22, [#allocation6], %s1498_s26, %s1498_s26, %s1499_s27  }
   0x7   :  { %s20_s29 = sshll.u32 %s1500_s28, 4  ;;  %s1501_s30 = smov 64   ;;  %s21_s29 = int_to_ptr.vmem [resolvable:$true] %s20_s29 }
   0x8   :  { %s1502_s6 = smov 4   ;;  %s45_s8 = sshll.u32 %s1803_s2, 4  ;;  %s46_s8 = int_to_ptr.hbm [resolvable:$true] %s45_s8 }
   0x9   :  { %26 = dma.hbm_to_vmem [thread:$0]  %s19_s25, 256, %s21_s29, [#allocation3], %s1501_s30, %s1501_s30, %s1502_s6  }
   0xa   :  { %s1503_s9 = smov [#allocation7]   ;;  %s55_s12 = sshll.u32 %s1804_s3, 4  ;;  %s56_s12 = int_to_ptr.hbm [resolvable:$true] %s55_s12 }
   0xb   :  { %s47_s10 = sshll.u32 %s1503_s9, 4  ;;  %s1504_s13 = smov [#allocation8]   ;;  %s48_s10 = int_to_ptr.vmem [resolvable:$true] %s47_s10 }
   0xc   :  { %50 = dma.hbm_to_vmem [thread:$0]  %s46_s8, 48, %s48_s10, [#allocation6]  }
   0xd   :  { %s57_s14 = sshll.u32 %s1504_s13, 4  ;;  %s58_s14 = int_to_ptr.vmem [resolvable:$true] %s57_s14 }
   0xe   :  { %63 = dma.hbm_to_vmem [thread:$0]  %s56_s12, 256, %s58_s14, [#allocation9], %s1501_s30, %s1501_s30, %s1502_s6  }
   0xf   :  { %1489 = dma.done.wait [#allocation3], 256  }
  0x10   :  { %1490 = vsyncadd [#allocation3], 4294967040 }
  0x11   :  { %1491 = dma.done.wait [#allocation6], 3120  }
  0x12   :  { %1492 = vsyncadd [#allocation6], 4294964176 }
  0x13   :  { %1493 = dma.done.wait [#allocation9], 256  }
  0x14   :  { %1494 = vsyncadd [#allocation9], 4294967040  ;;  %v1224_v0 = vld [vmem:[#allocation5 + $0xa8] sm:$0xf]  ;;  %v1284_v1 = vld [vmem:[#allocation5 + $0xb0] sm:$0xf0] }
  0x15   :  { %v1283_v2 = vld [vmem:[#allocation5 + $0xac] sm:$0xf]  ;;  %v1225_v3 = vor.u32 %v1284_v1, %v1224_v0  ;;  %v1226_v4 = vld [vmem:[#allocation5 + $0xb4] sm:$0xf0]  ;;  %v1212_v5 = vld [vmem:[#allocation5 + $0x90] sm:$0xf] }
  0x16   :  { %v1281_v6 = vld [vmem:[#allocation5 + $0x98] sm:$0xf0]  ;;  %v1229_v7 = vor.u32 %v1283_v2, %v1226_v4  ;;  %v1280_v8 = vld [vmem:[#allocation5 + $0x94] sm:$0xf]  ;;  %v1214_v9 = vld [vmem:[#allocation5 + $0x9c] sm:$0xf0] }
  0x17   :  { %267 = vmatpush.bf16.msra.mxu0 %v1225_v3  ;;  %v1213_v10 = vor.u32 %v1281_v6, %v1212_v5  ;;  %v1217_v11 = vor.u32 %v1280_v8, %v1214_v9  ;;  %v1200_v12 = vld [vmem:[#allocation5 + $0x78] sm:$0xf]  ;;  %v1278_v13 = vld [vmem:[#allocation5 + $0x80] sm:$0xf0]  ;;  %v1277_v14 = vld [vmem:[#allocation5 + $0x7c] sm:$0xf] }
  0x18   :  { %286 = vmatpush.bf16.msra.mxu1 %v1229_v7  ;;  %v1202_v15 = vld [vmem:[#allocation5 + $0x84] sm:$0xf0]  ;;  %v1201_v16 = vor.u32 %v1278_v13, %v1200_v12  ;;  %v1188_v18 = vld [vmem:[#allocation5 + $0x60] sm:$0xf]  ;;  %v1275_v19 = vld [vmem:[#allocation5 + $0x68] sm:$0xf0] }
  0x19   :  { %v1205_v17 = vor.u32 %v1277_v14, %v1202_v15  ;;  %v1274_v20 = vld [vmem:[#allocation5 + $0x64] sm:$0xf]  ;;  %v1190_v21 = vld [vmem:[#allocation5 + $0x6c] sm:$0xf0]  ;;  %v1189_v22 = vor.u32 %v1275_v19, %v1188_v18  ;;  %v1176_v24 = vld [vmem:[#allocation5 + $0x48] sm:$0xf] }
  0x1a   :  { %v1193_v23 = vor.u32 %v1274_v20, %v1190_v21  ;;  %v1272_v25 = vld [vmem:[#allocation5 + $0x50] sm:$0xf0]  ;;  %v1271_v26 = vld [vmem:[#allocation5 + $0x4c] sm:$0xf]  ;;  %v1178_v27 = vld [vmem:[#allocation5 + $0x54] sm:$0xf0] }
  0x1b   :  { %268 = vmatpush.bf16.msra.mxu0 %v1213_v10  ;;  %v1177_v28 = vor.u32 %v1272_v25, %v1176_v24  ;;  %v1181_v29 = vor.u32 %v1271_v26, %v1178_v27  ;;  %v1164_v30 = vld [vmem:[#allocation5 + $0x30] sm:$0xf]  ;;  %v1269_v31 = vld [vmem:[#allocation5 + $0x38] sm:$0xf0]  ;;  %v1268_v32 = vld [vmem:[#allocation5 + $0x34] sm:$0xf] }
  0x1c   :  { %287 = vmatpush.bf16.msra.mxu1 %v1217_v11  ;;  %v1166_v33 = vld [vmem:[#allocation5 + $0x3c] sm:$0xf0]  ;;  %v1165_v34 = vor.u32 %v1269_v31, %v1164_v30  ;;  %v1232_v35 = vld [vmem:[#allocation5 + $0xb0] sm:$0xf]  ;;  %v1285_v36 = vld [vmem:[#allocation5 + $0xb8] sm:$0xf0] }
  0x1d   :  { %v1220_v37 = vld [vmem:[#allocation5 + $0x98] sm:$0xf]  ;;  %v1169_v38 = vor.u32 %v1268_v32, %v1166_v33  ;;  %v1266_v40 = vld [vmem:[#allocation5 + $0x20] sm:$0xf0]  ;;  %v1233_v41 = vor.u32 %v1285_v36, %v1232_v35  ;;  %v1265_v43 = vld [vmem:[#allocation5 + $0x1c] sm:$0xf] }
  0x1e   :  { %v1152_v39 = vld [vmem:[#allocation5 + $0x18] sm:$0xf]  ;;  %v1282_v42 = vld [vmem:[#allocation5 + $0xa0] sm:$0xf0]  ;;  %v1154_v44 = vld [vmem:[#allocation5 + $0x24] sm:$0xf0] }
  0x1f   :  { %269 = vmatpush.bf16.msra.mxu0 %v1201_v16  ;;  %305 = vmatpush.bf16.msra.mxu2 %v1233_v41  ;;  %v1221_v45 = vor.u32 %v1282_v42, %v1220_v37  ;;  %v1153_v46 = vor.u32 %v1266_v40, %v1152_v39  ;;  %v1208_v47 = vld [vmem:[#allocation5 + $0x80] sm:$0xf]  ;;  %v1279_v48 = vld [vmem:[#allocation5 + $0x88] sm:$0xf0]  ;;  %v1157_v49 = vor.u32 %v1265_v43, %v1154_v44  ;;  %v1262_v52 = vld [vmem:[#allocation5 + $0x4] sm:$0xf] }
  0x20   :  { %288 = vmatpush.bf16.msra.mxu1 %v1205_v17  ;;  %v1140_v50 = vld [vmem:[#allocation5] sm:$0xf]  ;;  %v1263_v51 = vld [vmem:[#allocation5 + $0x8] sm:$0xf0]  ;;  %v1142_v53 = vld [vmem:[#allocation5 + $0xc] sm:$0xf0]  ;;  %v1209_v54 = vor.u32 %v1279_v48, %v1208_v47 }
  0x21   :  { %v1141_v55 = vor.u32 %v1263_v51, %v1140_v50  ;;  %v1196_v56 = vld [vmem:[#allocation5 + $0x68] sm:$0xf]  ;;  %v1276_v57 = vld [vmem:[#allocation5 + $0x70] sm:$0xf0]  ;;  %v1145_v58 = vor.u32 %v1262_v52, %v1142_v53  ;;  %v1184_v61 = vld [vmem:[#allocation5 + $0x50] sm:$0xf] }
  0x22   :  { %v1260_v59 = vld [vmem:[#allocation2] sm:$0xff]  ;;  %v1197_v60 = vor.u32 %v1276_v57, %v1196_v56  ;;  %v1273_v62 = vld [vmem:[#allocation5 + $0x58] sm:$0xf0]  ;;  %v1172_v0 = vld [vmem:[#allocation5 + $0x38] sm:$0xf]  ;;  %s1505_s2 = smov 112  }
  0x23   :  { %270 = vmatpush.bf16.msra.mxu0 %v1189_v22  ;;  %306 = vmatpush.bf16.msra.mxu2 %v1221_v45  ;;  %v1185_v63 = vor.u32 %v1273_v62, %v1184_v61  ;;  %v1270_v1 = vld [vmem:[#allocation5 + $0x40] sm:$0xf0]  ;;  %v1160_v3 = vld [vmem:[#allocation5 + $0x20] sm:$0xf]  ;;  %v1267_v4 = vld [vmem:[#allocation5 + $0x28] sm:$0xf0] }
  0x24   :  { %289 = vmatpush.bf16.msra.mxu1 %v1193_v23  ;;  %v1173_v2 = vor.u32 %v1270_v1, %v1172_v0  ;;  %v1161_v5 = vor.u32 %v1267_v4, %v1160_v3  ;;  %v1148_v6 = vld [vmem:[#allocation5 + $0x8] sm:$0xf]  ;;  %v1264_v7 = vld [vmem:[#allocation5 + $0x10] sm:$0xf0]  ;;  %v1261_v8 = vld [vmem:[#allocation2 + $0x8] sm:$0xff]  ;;  %s1506_s3 = smov 120  }
  0x25   :  { %v1149_v9 = vor.u32 %v1264_v7, %v1148_v6  ;;  %v1555_v10 = vld [vmem:[#allocation7] sm:$0x7]  ;;  %vm346_vm0 = vcmask 64512   ;;  %s1507_s15 = smov 104   ;;  %vm393_vm1 = vcmask 130048   ;;  %s1508_s16 = smov 8  }
  0x26   :  { %v121_v11 = vperm.slane %v1555_v10, 0  ;;  %v122_v12 = vperm.slane %v1555_v10, 1  ;;  %v123_v52 = vperm.slane %v1555_v10, 2  ;;  %s1509_s17 = smov 16   ;;  %s1510_s18 = smov 24   ;;  %vm1056_vm2 = vcmask 195584  }
  0x27   :  { %271 = vmatpush.bf16.msra.mxu0 %v1177_v28  ;;  %307 = vmatpush.bf16.msra.mxu2 %v1209_v54  ;;  %vm1081_vm3 = vcmask 261120   ;;  %s1511_s21 = smov [#allocation10]   ;;  %s1115_s25 = sshll.u32 %s1806_s5, 4  ;;  %s1116_s25 = int_to_ptr.hbm [resolvable:$true] %s1115_s25 }
  0x28   :  { %290 = vmatpush.bf16.msra.mxu1 %v1181_v29  ;;  %s1113_s22 = sshll.u32 %s1511_s21, 4  ;;  %s1114_s22 = int_to_ptr.vmem [resolvable:$true] %s1113_s22 }
  0x2b   :  { %272 = vmatpush.bf16.msra.mxu0 %v1165_v34  ;;  %308 = vmatpush.bf16.msra.mxu2 %v1197_v60 }
  0x2c   :  { %291 = vmatpush.bf16.msra.mxu1 %v1169_v38 }
  0x2f   :  { %273 = vmatpush.bf16.msra.mxu0 %v1153_v46  ;;  %309 = vmatpush.bf16.msra.mxu2 %v1185_v63 }
  0x30   :  { %292 = vmatpush.bf16.msra.mxu1 %v1157_v49 }
  0x33   :  { %274 = vmatpush.bf16.msra.mxu0 %v1141_v55  ;;  %310 = vmatpush.bf16.msra.mxu2 %v1173_v2 }
  0x34   :  { %293 = vmatpush.bf16.msra.mxu1 %v1145_v58 }
  0x36   :  { %275 = vmatmul.bf16.vlgmr.msra.gmra.mxu0 %v1260_v59 }
  0x37   :  { %294 = vmatmul.bf16.vlgmr.msra.gmra.mxu1 %v1260_v59  ;;  %311 = vmatpush.bf16.msra.mxu2 %v1161_v5 }
  0x3b   :  { %312 = vmatpush.bf16.msra.mxu2 %v1149_v9 }
  0x3e   :  { %313 = vmatmul.bf16.vlgmr.msra.gmra.mxu2 %v1260_v59 }
  0x46   :  { %280 = vmatmul.bf16.gmra.mxu0 %v1261_v8 }
  0x47   :  { %299 = vmatmul.bf16.gmra.mxu1 %v1261_v8 }
  0x4e   :  { %318 = vmatmul.bf16.gmra.mxu2 %v1261_v8 }
  0xb3   :  { %v276_v13 = vpop.f32.mrf.mxu0 }
  0xb4   :  { %v277_v14 = vadd.f32 %v276_v13, %v121_v11  ;;  %v295_v15 = vpop.f32.mrf.mxu1 }
  0xb5   :  { %v296_v16 = vadd.f32 %v295_v15, %v122_v12 }
  0xb7   :  { %v324_v17 = vpack.c.bf16 %v296_v16, %v277_v14 }
  0xb9   :  { %666 = vrot.lane.b32.xlu2 %v324_v17, %s1505_s2  ;;  %502 = vrot.lane.b32.xlu0 %v324_v17, %s1506_s3  ;;  %v336_v23 = vrot.slane %v324_v17, 4  ;;  %v340_v24 = vunpack.c.l.b16 %v324_v17 }
  0xbb   :  { %v278_v18 = vpop.f32.mrf.mxu0  ;;  %v343_v29 = vunpack.c.l.b16 %v336_v23 }
  0xbc   :  { %v279_v19 = vadd.f32 %v278_v18, %v121_v11  ;;  %v297_v20 = vpop.f32.mrf.mxu1 }
  0xbd   :  { %v298_v21 = vadd.f32 %v297_v20, %v122_v12 }
  0xbf   :  { %v326_v22 = vpack.c.bf16 %v298_v21, %v279_v19 }
  0xc1   :  { %504 = vrot.lane.b32.xlu0 %v326_v22, %s1506_s3  ;;  %v341_v25 = vunpack.c.l.b16 %v326_v22  ;;  %v337_v26 = vrot.slane %v326_v22, 4  ;;  %v314_v51 = vpop.f32.mrf.mxu2 }
  0xc2   :  { %v315_v53 = vadd.f32 %v314_v51, %v123_v52 }
  0xc3   :  { %v281_v27 = vpop.f32.mrf.mxu0  ;;  %v342_v28 = vpack.c.b16 %v341_v25, %v340_v24  ;;  %v344_v30 = vunpack.c.l.b16 %v337_v26 }
  0xc4   :  { %v300_v31 = vpop.f32.mrf.mxu1  ;;  %v282_v32 = vadd.f32 %v281_v27, %v121_v11  ;;  %v325_v54 = vpack.c.bf16 %v315_v53, %v315_v53 }
  0xc5   :  { %v301_v33 = vadd.f32 %v300_v31, %v122_v12  ;;  %514 = vrot.lane.b32.xlu1 %v342_v28, %s1506_s3  ;;  %v345_v34 = vpack.c.b16 %v344_v30, %v343_v29 }
  0xc6   :  { %v449_v57 = vunpack.c.l.b16 %v325_v54 }
  0xc7   :  { %v351_v35 = vsel %vm346_vm0, %v345_v34, 0  ;;  %v328_v36 = vpack.c.bf16 %v301_v33, %v282_v32 }
  0xc8   :  { %360 = vmatpush.bf16.xpose.msra.mxu3 %v351_v35 }
  0xc9   :  { %668 = vrot.lane.b32.xlu0 %v326_v22, %s1505_s2  ;;  %v338_v41 = vrot.slane %v328_v36, 4  ;;  %v367_v43 = vunpack.c.l.b16 %v328_v36  ;;  %v316_v55 = vpop.f32.mrf.mxu2 }
  0xca   :  { %v317_v56 = vadd.f32 %v316_v55, %v123_v52 }
  0xcb   :  { %v283_v37 = vpop.f32.mrf.mxu0  ;;  %v370_v46 = vunpack.c.l.b16 %v338_v41 }
  0xcc   :  { %v284_v38 = vadd.f32 %v283_v37, %v121_v11  ;;  %v302_v39 = vpop.f32.mrf.mxu1  ;;  %v327_v58 = vpack.c.bf16 %v317_v56, %v317_v56 }
  0xcd   :  { %v303_v40 = vadd.f32 %v302_v39, %v122_v12  ;;  %506 = vrot.lane.b32.xlu1 %v328_v36, %s1506_s3 }
  0xce   :  { %v450_v59 = vunpack.c.l.b16 %v327_v58 }
  0xcf   :  { %v330_v42 = vpack.c.bf16 %v303_v40, %v284_v38  ;;  %1234 = vmatmul.msk.bf16.vlgmr.msra.gmra.mxu3 %vm346_vm0, %v342_v28 }
  0xd0   :  { %v1582_v60 = vpack.c.b16 %v450_v59, %v449_v57 }
  0xd1   :  { %508 = vrot.lane.b32.xlu2 %v330_v42, %s1506_s3  ;;  %670 = vrot.lane.b32.xlu0 %v328_v36, %s1505_s2  ;;  %v368_v44 = vunpack.c.l.b16 %v330_v42  ;;  %v339_v45 = vrot.slane %v330_v42, 4  ;;  %v319_v61 = vpop.f32.mrf.mxu2 }
  0xd2   :  { %v320_v62 = vadd.f32 %v319_v61, %v123_v52 }
  0xd3   :  { %v369_v47 = vpack.c.b16 %v368_v44, %v367_v43  ;;  %v371_v48 = vunpack.c.l.b16 %v339_v45 }
  0xd4   :  { %v329_v63 = vpack.c.bf16 %v320_v62, %v320_v62 }
  0xd5   :  { %539 = vrot.lane.b32.xlu1 %v369_v47, %s1506_s3  ;;  %v372_v49 = vpack.c.b16 %v371_v48, %v370_v46 }
  0xd6   :  { %v477_v2 = vunpack.c.l.b16 %v329_v63 }
  0xd7   :  { %v377_v50 = vsel %vm346_vm0, %v372_v49, 0 }
  0xd8   :  { %386 = vmatpush.bf16.xpose.msrb.mxu3 %v377_v50 }
  0xd9   :  { %832 = vrot.lane.b32.xlu0 %v326_v22, %s1507_s15  ;;  %678 = vrot.lane.b32.xlu2 %v342_v28, %s1505_s2  ;;  %v321_v0 = vpop.f32.mrf.mxu2 }
  0xda   :  { %v322_v1 = vadd.f32 %v321_v0, %v123_v52 }
  0xdc   :  { %v331_v3 = vpack.c.bf16 %v322_v1, %v322_v1 }
  0xdd   :  { %672 = vrot.lane.b32.xlu1 %v330_v42, %s1505_s2 }
  0xde   :  { %v478_v4 = vunpack.c.l.b16 %v331_v3 }
  0xdf   :  { %1235 = vmatmul.msk.bf16.vlgmr.msrb.gmra.mxu3 %vm346_vm0, %v369_v47 }
  0xe0   :  { %463 = vmatpush.bf16.msra.mxu3 %v1582_v60  ;;  %v1587_v5 = vpack.c.b16 %v478_v4, %v477_v2 }
  0xe1   :  { %830 = vrot.lane.b32.xlu2 %v324_v17, %s1507_s15  ;;  %834 = vrot.lane.b32.xlu0 %v328_v36, %s1507_s15 }
  0xe4   :  { %491 = vmatpush.bf16.msrb.mxu3 %v1587_v5 }
  0xe5   :  { %703 = vrot.lane.b32.xlu1 %v369_v47, %s1505_s2 }
  0xe9   :  { %842 = vrot.lane.b32.xlu2 %v342_v28, %s1507_s15  ;;  %617 = vrot.lane.b32.xlu0 %v1582_v60, %s1506_s3 }
  0xed   :  { %836 = vrot.lane.b32.xlu1 %v330_v42, %s1507_s15 }
  0xf1   :  { %867 = vrot.lane.b32.xlu2 %v369_v47, %s1507_s15 }
  0xf5   :  { %642 = vrot.lane.b32.xlu1 %v1587_v5, %s1506_s3 }
 0x113   :  { %v667_v6 = vpop.permute.xlu2 %666 }
 0x114   :  { %v674_v16 = vrot.slane %v667_v6, 4 }
 0x116   :  { %v680_v21 = vunpack.c.l.b16 %v674_v16 }
 0x12b   :  { %v503_v7 = vpop.permute.xlu0 %502  ;;  %v509_v9 = vpop.permute.xlu2 %508 }
 0x12c   :  { %v510_v8 = vrot.slane %v503_v7, 4  ;;  %v513_v22 = vrot.slane %v509_v9, 4 }
 0x12e   :  { %v516_v12 = vunpack.c.l.b16 %v510_v8  ;;  %v542_v27 = vunpack.c.l.b16 %v513_v22 }
 0x133   :  { %v505_v10 = vpop.permute.xlu0 %504  ;;  %v679_v20 = vpop.permute.xlu2 %678 }
 0x134   :  { %v511_v11 = vrot.slane %v505_v10, 4 }
 0x136   :  { %v517_v13 = vunpack.c.l.b16 %v511_v11 }
 0x137   :  { %v515_v14 = vpop.permute.xlu1 %514 }
 0x138   :  { %v518_v15 = vpack.c.b16 %v517_v13, %v516_v12 }
 0x13a   :  { %v523_v17 = vsel %vm346_vm0, %v518_v15, 0 }
 0x13b   :  { %532 = vmatpush.bf16.xpose.msrb.mxu1 %v523_v17  ;;  %v669_v18 = vpop.permute.xlu0 %668  ;;  %v831_v33 = vpop.permute.xlu2 %830 }
 0x13c   :  { %v675_v19 = vrot.slane %v669_v18, 4  ;;  %v838_v35 = vrot.slane %v831_v33, 4 }
 0x13e   :  { %v681_v23 = vunpack.c.l.b16 %v675_v19  ;;  %v844_v38 = vunpack.c.l.b16 %v838_v35 }
 0x13f   :  { %v507_v24 = vpop.permute.xlu1 %506 }
 0x140   :  { %v512_v25 = vrot.slane %v507_v24, 4  ;;  %v682_v26 = vpack.c.b16 %v681_v23, %v680_v21 }
 0x142   :  { %v541_v28 = vunpack.c.l.b16 %v512_v25  ;;  %1238 = vmatmul.msk.bf16.vlgmr.msrb.gmra.mxu1 %vm346_vm0, %v515_v14  ;;  %v687_v29 = vsel %vm346_vm0, %v682_v26, 0 }
 0x143   :  { %696 = vmatpush.bf16.xpose.msrb.mxu0 %v687_v29  ;;  %v671_v30 = vpop.permute.xlu0 %670  ;;  %v843_v52 = vpop.permute.xlu2 %842 }
 0x144   :  { %v543_v31 = vpack.c.b16 %v542_v27, %v541_v28  ;;  %v676_v39 = vrot.slane %v671_v30, 4 }
 0x146   :  { %v548_v32 = vsel %vm346_vm0, %v543_v31, 0  ;;  %v705_v44 = vunpack.c.l.b16 %v676_v39 }
 0x147   :  { %v540_v34 = vpop.permute.xlu1 %539  ;;  %557 = vmatpush.bf16.xpose.msra.mxu1 %v548_v32 }
 0x14a   :  { %1242 = vmatmul.msk.bf16.vlgmr.msrb.gmra.mxu0 %vm346_vm0, %v679_v20 }
 0x14b   :  { %v833_v36 = vpop.permute.xlu0 %832  ;;  %v868_v4 = vpop.permute.xlu2 %867 }
 0x14c   :  { %v839_v37 = vrot.slane %v833_v36, 4 }
 0x14e   :  { %v845_v40 = vunpack.c.l.b16 %v839_v37 }
 0x14f   :  { %v673_v41 = vpop.permute.xlu1 %672 }
 0x150   :  { %v846_v42 = vpack.c.b16 %v845_v40, %v844_v38  ;;  %v677_v43 = vrot.slane %v673_v41, 4 }
 0x152   :  { %v706_v45 = vunpack.c.l.b16 %v677_v43  ;;  %v362_v46 = vpop.f32.mrf.mxu3  ;;  %1239 = vmatmul.msk.bf16.vlgmr.msra.gmra.mxu1 %vm346_vm0, %v540_v34  ;;  %v851_v47 = vsel %vm346_vm0, %v846_v42, 0 }
 0x153   :  { %860 = vmatpush.bf16.xpose.msra.mxu0 %v851_v47  ;;  %v394_v48 = vsel %vm393_vm1, %v362_v46, -inf  ;;  %v835_v54 = vpop.permute.xlu0 %834 }
 0x154   :  { %v707_v49 = vpack.c.b16 %v706_v45, %v705_v44  ;;  %395 = vmax.xlane.f32.xlu0 %v394_v48  ;;  %v840_v56 = vrot.slane %v835_v54, 4 }
 0x156   :  { %v712_v50 = vsel %vm346_vm0, %v707_v49, 0  ;;  %v869_v59 = vunpack.c.l.b16 %v840_v56 }
 0x157   :  { %v704_v51 = vpop.permute.xlu1 %703  ;;  %721 = vmatpush.bf16.xpose.msrb.mxu1 %v712_v50 }
 0x15a   :  { %v364_v53 = vpop.f32.mrf.mxu3  ;;  %1246 = vmatmul.msk.bf16.vlgmr.msra.gmra.mxu0 %vm346_vm0, %v843_v52 }
 0x15b   :  { %v397_v55 = vsel %vm393_vm1, %v364_v53, -inf  ;;  %v618_v6 = vpop.permute.xlu0 %617 }
 0x15c   :  { %398 = vmax.xlane.f32.xlu1 %v397_v55  ;;  %630 = vmatpush.bf16.msrb.mxu2 %v618_v6 }
 0x15f   :  { %v837_v57 = vpop.permute.xlu1 %836 }
 0x160   :  { %v841_v58 = vrot.slane %v837_v57, 4 }
 0x162   :  { %v870_v61 = vunpack.c.l.b16 %v841_v58  ;;  %v388_v62 = vpop.f32.mrf.mxu3  ;;  %1243 = vmatmul.msk.bf16.vlgmr.msrb.gmra.mxu1 %vm346_vm0, %v704_v51 }
 0x163   :  { %v400_v63 = vsel %vm393_vm1, %v388_v62, -inf }
 0x164   :  { %v871_v0 = vpack.c.b16 %v870_v61, %v869_v59  ;;  %401 = vmax.xlane.f32.xlu2 %v400_v63 }
 0x166   :  { %v876_v1 = vsel %vm346_vm0, %v871_v0, 0 }
 0x167   :  { %885 = vmatpush.bf16.xpose.msra.mxu1 %v876_v1  ;;  %v1618_v14 = vpop.permute.xlu1 %642 }
 0x16a   :  { %v390_v2 = vpop.f32.mrf.mxu3 }
 0x16b   :  { %v403_v3 = vsel %vm393_vm1, %v390_v2, -inf }
 0x16c   :  { %404 = vmax.xlane.f32.xlu2 %v403_v3 }
 0x172   :  { %1247 = vmatmul.msk.bf16.vlgmr.msra.gmra.mxu1 %vm346_vm0, %v868_v4 }
 0x1bf   :  { %v1608_v7 = vpop.f32.mrf.mxu1 }
 0x1c0   :  { %v564_v8 = vsel %vm393_vm1, %v1608_v7, -inf }
 0x1c1   :  { %565 = vmax.xlane.f32.xlu0 %v564_v8 }
 0x1c7   :  { %v1612_v9 = vpop.f32.mrf.mxu1  ;;  %v1614_v10 = vpop.f32.mrf.mxu0 }
 0x1c8   :  { %v396_v11 = vpop.xlane.xlu0 %395  ;;  %v728_v12 = vsel %vm393_vm1, %v1614_v10, -inf  ;;  %v567_v18 = vsel %vm393_vm1, %v1612_v9, -inf }
 0x1c9   :  { %v406_v13 = vsub.f32 %v362_v46, %v396_v11  ;;  %729 = vmax.xlane.f32.xlu1 %v728_v12 }
 0x1cb   :  { %v410_v15 = vmul.f32 1.442695, %v406_v13 }
 0x1cd   :  { %1305 = vpow2.f32 %v410_v15 }
 0x1cf   :  { %v1620_v16 = vpop.f32.mrf.mxu1  ;;  %v1622_v17 = vpop.f32.mrf.mxu0 }
 0x1d0   :  { %v731_v19 = vsel %vm393_vm1, %v1622_v17, -inf  ;;  %v399_v21 = vpop.xlane.xlu1 %398  ;;  %v570_v28 = vsel %vm393_vm1, %v1620_v16, -inf }
 0x1d1   :  { %568 = vmax.xlane.f32.xlu1 %v567_v18  ;;  %732 = vmax.xlane.f32.xlu2 %v731_v19  ;;  %v407_v24 = vsub.f32 %v364_v53, %v399_v21 }
 0x1d3   :  { %v1628_v20 = vpop.eup %1305  ;;  %v412_v29 = vmul.f32 1.442695, %v407_v24 }
 0x1d4   :  { %v418_v27 = vsel %vm393_vm1, %v1628_v20, 0.0 }
 0x1d5   :  { %1307 = vpow2.f32 %v412_v29 }
 0x1d7   :  { %v1630_v22 = vpop.f32.mrf.mxu1  ;;  %v1632_v23 = vpop.f32.mrf.mxu0 }
 0x1d8   :  { %v402_v25 = vpop.xlane.xlu2 %401  ;;  %v573_v26 = vsel %vm393_vm1, %v1630_v22, -inf  ;;  %v892_v36 = vsel %vm393_vm1, %v1632_v23, -inf }
 0x1d9   :  { %574 = vmax.xlane.f32.xlu0 %v573_v26  ;;  %419 = vadd.xlane.f32.xlu1 %v418_v27  ;;  %v408_v32 = vsub.f32 %v388_v62, %v402_v25 }
 0x1da   :  { %571 = vmax.xlane.f32.xlu2 %v570_v28 }
 0x1db   :  { %v414_v38 = vmul.f32 1.442695, %v408_v32  ;;  %v1648_v39 = vpop.eup %1307 }
 0x1dc   :  { %v421_v43 = vsel %vm393_vm1, %v1648_v39, 0.0 }
 0x1df   :  { %v1640_v30 = vpop.f32.mrf.mxu1  ;;  %v1642_v31 = vpop.f32.mrf.mxu0 }
 0x1e0   :  { %v405_v33 = vpop.xlane.xlu2 %404  ;;  %v895_v34 = vsel %vm393_vm1, %v1642_v31, -inf  ;;  %v734_v41 = vsel %vm393_vm1, %v1640_v30, -inf }
 0x1e1   :  { %v409_v35 = vsub.f32 %v390_v2, %v405_v33  ;;  %896 = vmax.xlane.f32.xlu0 %v895_v34 }
 0x1e2   :  { %893 = vmax.xlane.f32.xlu2 %v892_v36 }
 0x1e3   :  { %v416_v37 = vmul.f32 1.442695, %v409_v35 }
 0x1e5   :  { %1309 = vpow2.f32 %v416_v37 }
 0x1e6   :  { %1311 = vpow2.f32 %v414_v38 }
 0x1e7   :  { %v1650_v40 = vpop.f32.mrf.mxu1 }
 0x1e8   :  { %v737_v42 = vsel %vm393_vm1, %v1650_v40, -inf }
 0x1e9   :  { %735 = vmax.xlane.f32.xlu0 %v734_v41  ;;  %738 = vmax.xlane.f32.xlu1 %v737_v42 }
 0x1ea   :  { %422 = vadd.xlane.f32.xlu2 %v421_v43 }
 0x1eb   :  { %v1658_v44 = vpop.eup %1309 }
 0x1ec   :  { %v1660_v45 = vpop.eup %1311  ;;  %v427_v47 = vsel %vm393_vm1, %v1658_v44, 0.0 }
 0x1ed   :  { %v424_v48 = vsel %vm393_vm1, %v1660_v45, 0.0 }
 0x1ef   :  { %v1662_v46 = vpop.f32.mrf.mxu1 }
 0x1f0   :  { %v898_v51 = vsel %vm393_vm1, %v1662_v46, -inf }
 0x1f1   :  { %428 = vadd.xlane.f32.xlu0 %v427_v47 }
 0x1f2   :  { %425 = vadd.xlane.f32.xlu2 %v424_v48 }
 0x1f7   :  { %v1668_v49 = vpop.f32.mrf.mxu1 }
 0x1f8   :  { %v901_v50 = vsel %vm393_vm1, %v1668_v49, -inf }
 0x1f9   :  { %902 = vmax.xlane.f32.xlu1 %v901_v50  ;;  %899 = vmax.xlane.f32.xlu0 %v898_v51 }
 0x20d   :  { %781 = vrot.lane.b32.xlu0 %v1582_v60, %s1505_s2 }
 0x234   :  { %v566_v52 = vpop.xlane.xlu0 %565 }
 0x235   :  { %v576_v53 = vsub.f32 %v1608_v7, %v566_v52 }
 0x237   :  { %v580_v54 = vmul.f32 1.442695, %v576_v53 }
 0x239   :  { %1313 = vpow2.f32 %v580_v54 }
 0x23c   :  { %v730_v55 = vpop.xlane.xlu1 %729 }
 0x23d   :  { %v740_v56 = vsub.f32 %v1614_v10, %v730_v55 }
 0x23f   :  { %v1678_v57 = vpop.eup %1313  ;;  %v744_v58 = vmul.f32 1.442695, %v740_v56 }
 0x240   :  { %v588_v59 = vsel %vm393_vm1, %v1678_v57, 0.0 }
 0x241   :  { %1315 = vpow2.f32 %v744_v58  ;;  %589 = vadd.xlane.f32.xlu1 %v588_v59 }
 0x244   :  { %v569_v61 = vpop.xlane.xlu1 %568  ;;  %v733_v62 = vpop.xlane.xlu2 %732 }
 0x245   :  { %v577_v63 = vsub.f32 %v1612_v9, %v569_v61  ;;  %v741_v2 = vsub.f32 %v1622_v17, %v733_v62 }
 0x247   :  { %v1683_v0 = vpop.eup %1315  ;;  %v582_v1 = vmul.f32 1.442695, %v577_v63  ;;  %v746_v4 = vmul.f32 1.442695, %v741_v2 }
 0x248   :  { %v752_v3 = vsel %vm393_vm1, %v1683_v0, 0.0 }
 0x249   :  { %1317 = vpow2.f32 %v582_v1  ;;  %753 = vadd.xlane.f32.xlu1 %v752_v3 }
 0x24a   :  { %1319 = vpow2.f32 %v746_v4 }
 0x24c   :  { %v575_v6 = vpop.xlane.xlu0 %574  ;;  %v420_v15 = vpop.xlane.xlu1 %419 }
 0x24d   :  { %v572_v7 = vpop.xlane.xlu2 %571  ;;  %v579_v9 = vsub.f32 %v1630_v22, %v575_v6 }
 0x24e   :  { %v578_v8 = vsub.f32 %v1620_v16, %v572_v7 }
 0x24f   :  { %v1689_v10 = vpop.eup %1317  ;;  %v586_v13 = vmul.f32 1.442695, %v579_v9 }
 0x250   :  { %v584_v11 = vmul.f32 1.442695, %v578_v8  ;;  %v591_v12 = vsel %vm393_vm1, %v1689_v10, 0.0  ;;  %v1694_v18 = vpop.eup %1319 }
 0x251   :  { %592 = vadd.xlane.f32.xlu2 %v591_v12  ;;  %v755_v16 = vsel %vm393_vm1, %v1694_v18, 0.0 }
 0x252   :  { %1321 = vpow2.f32 %v584_v11 }
 0x253   :  { %1323 = vpow2.f32 %v586_v13 }
 0x254   :  { %v897_v17 = vpop.xlane.xlu0 %896  ;;  %1325 = vrcp.f32 %v420_v15 }
 0x255   :  { %v894_v19 = vpop.xlane.xlu2 %893  ;;  %v905_v47 = vsub.f32 %v1642_v31, %v897_v17 }
 0x256   :  { %v904_v33 = vsub.f32 %v1632_v23, %v894_v19 }
 0x257   :  { %v910_v54 = vmul.f32 1.442695, %v905_v47 }
 0x258   :  { %v1696_v21 = vpop.eup %1321  ;;  %v908_v38 = vmul.f32 1.442695, %v904_v33 }
 0x259   :  { %756 = vadd.xlane.f32.xlu2 %v755_v16  ;;  %v594_v22 = vsel %vm393_vm1, %v1696_v21, 0.0  ;;  %v1702_v26 = vpop.eup %1323 }
 0x25a   :  { %595 = vadd.xlane.f32.xlu1 %v594_v22  ;;  %v1326_v32 = vpop.eup %1325  ;;  %v597_v36 = vsel %vm393_vm1, %v1702_v26, 0.0 }
 0x25b   :  { %v434_v37 = vmul.f32 %v1326_v32, %v1628_v20 }
 0x25c   :  { %v736_v24 = vpop.xlane.xlu0 %735  ;;  %v739_v25 = vpop.xlane.xlu1 %738 }
 0x25d   :  { %v742_v27 = vsub.f32 %v1640_v30, %v736_v24  ;;  %v743_v28 = vsub.f32 %v1650_v40, %v739_v25  ;;  %v423_v29 = vpop.xlane.xlu2 %422  ;;  %v438_v42 = vpack.c.bf16 %v434_v37, %v434_v37 }
 0x25e   :  { %1327 = vrcp.f32 %v423_v29 }
 0x25f   :  { %v748_v34 = vmul.f32 1.442695, %v742_v27  ;;  %v750_v35 = vmul.f32 1.442695, %v743_v28  ;;  %v444_v51 = vunpack.c.l.b16 %v438_v42 }
 0x261   :  { %1329 = vpow2.f32 %v748_v34  ;;  %598 = vadd.xlane.f32.xlu2 %v597_v36 }
 0x262   :  { %1331 = vpow2.f32 %v750_v35 }
 0x264   :  { %v1328_v41 = vpop.eup %1327  ;;  %v429_v30 = vpop.xlane.xlu0 %428 }
 0x265   :  { %v435_v40 = vmul.f32 %v1328_v41, %v1648_v39  ;;  %1333 = vrcp.f32 %v429_v30  ;;  %v426_v43 = vpop.xlane.xlu2 %425 }
 0x266   :  { %1335 = vrcp.f32 %v426_v43 }
 0x267   :  { %v1711_v23 = vpop.eup %1329  ;;  %1337 = vpow2.f32 %v908_v38  ;;  %v439_v48 = vpack.c.bf16 %v435_v40, %v435_v40 }
 0x268   :  { %v1714_v50 = vpop.eup %1331  ;;  %v758_v20 = vsel %vm393_vm1, %v1711_v23, 0.0  ;;  %1339 = vpow2.f32 %v910_v54 }
 0x269   :  { %v445_v52 = vunpack.c.l.b16 %v439_v48  ;;  %v761_v53 = vsel %vm393_vm1, %v1714_v50, 0.0  ;;  %759 = vadd.xlane.f32.xlu2 %v758_v20 }
 0x26a   :  { %762 = vadd.xlane.f32.xlu0 %v761_v53 }
 0x26b   :  { %v1334_v39 = vpop.eup %1333  ;;  %v446_v55 = vpack.c.b16 %v445_v52, %v444_v51 }
 0x26c   :  { %v1336_v56 = vpop.eup %1335  ;;  %v903_v58 = vpop.xlane.xlu1 %902  ;;  %v437_v61 = vmul.f32 %v1334_v39, %v1658_v44 }
 0x26d   :  { %v1720_v31 = vpop.eup %1337  ;;  %v907_v59 = vsub.f32 %v1668_v49, %v903_v58  ;;  %1236 = vmatmul.msk.bf16.vlgmr.msra.gmra.mxu3 %vm393_vm1, %v446_v55  ;;  %v436_v62 = vmul.f32 %v1336_v56, %v1660_v45  ;;  %v900_v44 = vpop.xlane.xlu0 %899 }
 0x26e   :  { %655 = vmatpush.bf16.msra.mxu3 %v1618_v14  ;;  %v916_v1 = vsel %vm393_vm1, %v1720_v31, 0.0  ;;  %v441_v2 = vpack.c.bf16 %v437_v61, %v437_v61  ;;  %v1731_v49 = vpop.eup %1339  ;;  %v906_v11 = vsub.f32 %v1662_v46, %v900_v44 }
 0x26f   :  { %v914_v63 = vmul.f32 1.442695, %v907_v59  ;;  %v440_v3 = vpack.c.bf16 %v436_v62, %v436_v62  ;;  %v919_v7 = vsel %vm393_vm1, %v1731_v49, 0.0 }
 0x270   :  { %v473_v14 = vunpack.c.l.b16 %v441_v2  ;;  %v912_v12 = vmul.f32 1.442695, %v906_v11 }
 0x271   :  { %1341 = vpow2.f32 %v914_v63  ;;  %917 = vadd.xlane.f32.xlu2 %v916_v1  ;;  %v472_v6 = vunpack.c.l.b16 %v440_v3 }
 0x272   :  { %1343 = vpow2.f32 %v912_v12 }
 0x273   :  { %806 = vrot.lane.b32.xlu1 %v1587_v5, %s1505_s2  ;;  %v474_v8 = vpack.c.b16 %v473_v14, %v472_v6 }
 0x277   :  { %v1733_v4 = vpop.eup %1341 }
 0x278   :  { %v925_v45 = vsel %vm393_vm1, %v1733_v4, 0.0  ;;  %v1743_v13 = vpop.eup %1343 }
 0x279   :  { %926 = vadd.xlane.f32.xlu0 %v925_v45  ;;  %920 = vadd.xlane.f32.xlu2 %v919_v7  ;;  %v922_v15 = vsel %vm393_vm1, %v1743_v13, 0.0 }
 0x27d   :  { %1237 = vmatmul.msk.bf16.vlgmr.msrb.gmra.mxu3 %vm393_vm1, %v474_v8 }
 0x27f   :  { %v782_v9 = vpop.permute.xlu0 %781 }
 0x280   :  { %794 = vmatpush.bf16.msra.mxu2 %v782_v9 }
 0x291   :  { %945 = vrot.lane.b32.xlu2 %v1582_v60, %s1507_s15 }
 0x299   :  { %970 = vrot.lane.b32.xlu2 %v1587_v5, %s1507_s15 }
 0x29d   :  { %923 = vadd.xlane.f32.xlu1 %v922_v15 }
 0x2b4   :  { %v590_v17 = vpop.xlane.xlu1 %589 }
 0x2b5   :  { %1345 = vrcp.f32 %v590_v17 }
 0x2bb   :  { %v1346_v16 = vpop.eup %1345 }
 0x2bc   :  { %v754_v22 = vpop.xlane.xlu1 %753  ;;  %v604_v46 = vmul.f32 %v1346_v16, %v1678_v57 }
 0x2be   :  { %v608_v60 = vpack.c.bf16 %v604_v46, %v604_v46 }
 0x2c0   :  { %v614_v29 = vunpack.c.l.b16 %v608_v60 }
 0x2c4   :  { %v593_v19 = vpop.xlane.xlu2 %592 }
 0x2c5   :  { %1347 = vrcp.f32 %v593_v19 }
 0x2cb   :  { %v1348_v24 = vpop.eup %1347 }
 0x2cc   :  { %v605_v25 = vmul.f32 %v1348_v24, %v1689_v10  ;;  %v757_v27 = vpop.xlane.xlu2 %756 }
 0x2cd   :  { %v596_v28 = vpop.xlane.xlu1 %595  ;;  %1349 = vrcp.f32 %v757_v27 }
 0x2ce   :  { %1351 = vrcp.f32 %v754_v22  ;;  %v609_v5 = vpack.c.bf16 %v605_v25, %v605_v25 }
 0x2cf   :  { %1353 = vrcp.f32 %v596_v28 }
 0x2d0   :  { %v615_v32 = vunpack.c.l.b16 %v609_v5 }
 0x2d2   :  { %v616_v33 = vpack.c.b16 %v615_v32, %v614_v29 }
 0x2d3   :  { %v1350_v34 = vpop.eup %1349 }
 0x2d4   :  { %v1352_v35 = vpop.eup %1351  ;;  %1240 = vmatmul.msk.bf16.vlgmr.msrb.gmra.mxu2 %vm393_vm1, %v616_v33  ;;  %v599_v36 = vpop.xlane.xlu2 %598  ;;  %v769_v57 = vmul.f32 %v1350_v34, %v1694_v18 }
 0x2d5   :  { %v1354_v37 = vpop.eup %1353  ;;  %1355 = vrcp.f32 %v599_v36  ;;  %v768_v10 = vmul.f32 %v1352_v35, %v1683_v0 }
 0x2d6   :  { %v606_v38 = vmul.f32 %v1354_v37, %v1696_v21  ;;  %v773_v41 = vpack.c.bf16 %v769_v57, %v769_v57 }
 0x2d7   :  { %v772_v42 = vpack.c.bf16 %v768_v10, %v768_v10 }
 0x2d8   :  { %v610_v40 = vpack.c.bf16 %v606_v38, %v606_v38  ;;  %v779_v20 = vunpack.c.l.b16 %v773_v41 }
 0x2d9   :  { %v778_v52 = vunpack.c.l.b16 %v772_v42 }
 0x2da   :  { %v639_v53 = vunpack.c.l.b16 %v610_v40 }
 0x2db   :  { %v1356_v30 = vpop.eup %1355  ;;  %v780_v18 = vpack.c.b16 %v779_v20, %v778_v52 }
 0x2dc   :  { %v607_v43 = vmul.f32 %v1356_v30, %v1702_v26  ;;  %v760_v47 = vpop.xlane.xlu2 %759 }
 0x2dd   :  { %v763_v48 = vpop.xlane.xlu0 %762  ;;  %1357 = vrcp.f32 %v760_v47 }
 0x2de   :  { %v611_v51 = vpack.c.bf16 %v607_v43, %v607_v43  ;;  %1359 = vrcp.f32 %v763_v48 }
 0x2e0   :  { %v640_v39 = vunpack.c.l.b16 %v611_v51 }
 0x2e2   :  { %v641_v54 = vpack.c.b16 %v640_v39, %v639_v53 }
 0x2e3   :  { %v1358_v0 = vpop.eup %1357 }
 0x2e4   :  { %v1360_v55 = vpop.eup %1359  ;;  %1241 = vmatmul.msk.bf16.vlgmr.msra.gmra.mxu3 %vm393_vm1, %v641_v54  ;;  %1244 = vmatmul.msk.bf16.vlgmr.msra.gmra.mxu2 %vm393_vm1, %v780_v18  ;;  %v918_v21 = vpop.xlane.xlu2 %917  ;;  %v770_v58 = vmul.f32 %v1358_v0, %v1711_v23 }
 0x2e5   :  { %v807_v56 = vpop.permute.xlu1 %806  ;;  %v771_v26 = vmul.f32 %v1360_v55, %v1714_v50  ;;  %1361 = vrcp.f32 %v918_v21 }
 0x2e6   :  { %819 = vmatpush.bf16.msrb.mxu3 %v807_v56  ;;  %v774_v61 = vpack.c.bf16 %v770_v58, %v770_v58 }
 0x2e7   :  { %v775_v59 = vpack.c.bf16 %v771_v26, %v771_v26 }
 0x2e8   :  { %v803_v2 = vunpack.c.l.b16 %v774_v61 }
 0x2e9   :  { %v804_v1 = vunpack.c.l.b16 %v775_v59 }
 0x2eb   :  { %v1362_v63 = vpop.eup %1361  ;;  %v805_v6 = vpack.c.b16 %v804_v1, %v803_v2 }
 0x2ec   :  { %v921_v62 = vpop.xlane.xlu2 %920  ;;  %v932_v14 = vmul.f32 %v1362_v63, %v1720_v31 }
 0x2ed   :  { %1363 = vrcp.f32 %v921_v62 }
 0x2ee   :  { %v936_v50 = vpack.c.bf16 %v932_v14, %v932_v14 }
 0x2f0   :  { %v465_v3 = vpop.f32.mrf.mxu3  ;;  %v942_v11 = vunpack.c.l.b16 %v936_v50 }
 0x2f1   :  { %v498_v8 = vpack.c.bf16 %v465_v3, %v465_v3 }
 0x2f3   :  { %v1364_v44 = vpop.eup %1363  ;;  %v1763_v19 = vunpack.c.l.b16 %v498_v8 }
 0x2f4   :  { %1245 = vmatmul.msk.bf16.vlgmr.msrb.gmra.mxu3 %vm393_vm1, %v805_v6  ;;  %v946_v45 = vpop.permute.xlu2 %945  ;;  %v933_v23 = vmul.f32 %v1364_v44, %v1731_v49  ;;  %v927_v49 = vpop.xlane.xlu0 %926 }
 0x2f5   :  { %958 = vmatpush.bf16.msrb.mxu2 %v946_v45  ;;  %1365 = vrcp.f32 %v927_v49 }
 0x2f6   :  { %v937_v7 = vpack.c.bf16 %v933_v23, %v933_v23 }
 0x2f8   :  { %v467_v9 = vpop.f32.mrf.mxu3  ;;  %v943_v12 = vunpack.c.l.b16 %v937_v7 }
 0x2f9   :  { %v499_v15 = vpack.c.bf16 %v467_v9, %v467_v9  ;;  %v1287_v9 = vld [vmem:[#allocation8 + $0x8] sm:$0xff] }
 0x2fa   :  { %v944_v17 = vpack.c.b16 %v943_v12, %v942_v11  ;;  %1092 = vmatpush.bf16.msrb.mxu0 %v1287_v9  ;;  %v1286_v11 = vld [vmem:[#allocation8] sm:$0xff] }
 0x2fb   :  { %v1765_v16 = vunpack.c.l.b16 %v499_v15  ;;  %v1366_v24 = vpop.eup %1365 }
 0x2fc   :  { %v971_v31 = vpop.permute.xlu2 %970  ;;  %1248 = vmatmul.msk.bf16.vlgmr.msrb.gmra.mxu2 %vm393_vm1, %v944_v17  ;;  %v935_v60 = vmul.f32 %v1366_v24, %v1733_v4 }
 0x2fd   :  { %v1002_v22 = vpack.c.b16 %v1765_v16, %v1763_v19  ;;  %983 = vmatpush.bf16.msra.mxu3 %v971_v31 }
 0x2fe   :  { %v939_v27 = vpack.c.bf16 %v935_v60, %v935_v60  ;;  %1093 = vmatpush.bf16.msrb.mxu0 %v1286_v11 }
 0x300   :  { %v968_v29 = vunpack.c.l.b16 %v939_v27  ;;  %v1773_v34 = vpop.f32.mrf.mxu3 }
 0x301   :  { %v500_v60 = vpack.c.bf16 %v1773_v34, %v1773_v34 }
 0x303   :  { %v1000_v27 = vunpack.c.l.b16 %v500_v60 }
 0x308   :  { %v1775_v37 = vpop.f32.mrf.mxu3 }
 0x309   :  { %v501_v24 = vpack.c.bf16 %v1775_v37, %v1775_v37 }
 0x310   :  { %v924_v46 = vpop.xlane.xlu1 %923 }
 0x311   :  { %1367 = vrcp.f32 %v924_v46 }
 0x317   :  { %v1368_v25 = vpop.eup %1367 }
 0x318   :  { %v934_v28 = vmul.f32 %v1368_v25, %v1743_v13  ;;  %v1001_v25 = vunpack.c.l.b16 %v501_v24 }
 0x31a   :  { %v938_v5 = vpack.c.bf16 %v934_v28, %v934_v28  ;;  %v1003_v16 = vpack.c.b16 %v1001_v25, %v1000_v27 }
 0x31c   :  { %v967_v32 = vunpack.c.l.b16 %v938_v5 }
 0x31e   :  { %v969_v33 = vpack.c.b16 %v968_v29, %v967_v32 }
 0x320   :  { %1249 = vmatmul.msk.bf16.vlgmr.msra.gmra.mxu3 %vm393_vm1, %v969_v33  ;;  %v1304_v33 = vld [vmem:[%s1805_s4] ss:$0 sm:$0xff]  ;;  %s1512_s4 = smov 128  }
 0x357   :  { %v632_v35 = vpop.f32.mrf.mxu2 }
 0x358   :  { %v662_v36 = vpack.c.bf16 %v632_v35, %v632_v35 }
 0x35a   :  { %v1008_v38 = vunpack.c.l.b16 %v662_v36 }
 0x35f   :  { %v634_v57 = vpop.f32.mrf.mxu2 }
 0x360   :  { %v663_v10 = vpack.c.bf16 %v634_v57, %v634_v57 }
 0x362   :  { %v1009_v4 = vunpack.c.l.b16 %v663_v10 }
 0x364   :  { %v1012_v41 = vpack.c.b16 %v1009_v4, %v1008_v38 }
 0x366   :  { %1014 = vrot.lane.b32.xlu0 %v1012_v41, %s1508_s16 }
 0x367   :  { %v657_v13 = vpop.f32.mrf.mxu3  ;;  %v796_v30 = vpop.f32.mrf.mxu2 }
 0x368   :  { %v664_v42 = vpack.c.bf16 %v657_v13, %v657_v13  ;;  %v826_v40 = vpack.c.bf16 %v796_v30, %v796_v30 }
 0x36a   :  { %v1010_v51 = vunpack.c.l.b16 %v664_v42  ;;  %v1022_v52 = vunpack.c.l.b16 %v826_v40 }
 0x36f   :  { %v659_v43 = vpop.f32.mrf.mxu3  ;;  %v798_v47 = vpop.f32.mrf.mxu2 }
 0x370   :  { %v665_v48 = vpack.c.bf16 %v659_v43, %v659_v43  ;;  %v827_v20 = vpack.c.bf16 %v798_v47, %v798_v47 }
 0x372   :  { %v1011_v53 = vunpack.c.l.b16 %v665_v48  ;;  %v1023_v39 = vunpack.c.l.b16 %v827_v20 }
 0x374   :  { %v1013_v18 = vpack.c.b16 %v1011_v53, %v1010_v51  ;;  %v1026_v54 = vpack.c.b16 %v1023_v39, %v1022_v52 }
 0x376   :  { %1028 = vrot.lane.b32.xlu2 %v1026_v54, %s1509_s17  ;;  %1016 = vrot.lane.b32.xlu1 %v1013_v18, %s1508_s16 }
 0x377   :  { %v821_v0 = vpop.f32.mrf.mxu3 }
 0x378   :  { %v828_v1 = vpack.c.bf16 %v821_v0, %v821_v0 }
 0x37a   :  { %v1024_v3 = vunpack.c.l.b16 %v828_v1 }
 0x37f   :  { %v960_v55 = vpop.f32.mrf.mxu2  ;;  %v823_v58 = vpop.f32.mrf.mxu3 }
 0x380   :  { %v990_v21 = vpack.c.bf16 %v960_v55, %v960_v55  ;;  %v829_v62 = vpack.c.bf16 %v823_v58, %v823_v58 }
 0x382   :  { %v1036_v59 = vunpack.c.l.b16 %v990_v21  ;;  %v1025_v2 = vunpack.c.l.b16 %v829_v62 }
 0x384   :  { %v1027_v14 = vpack.c.b16 %v1025_v2, %v1024_v3 }
 0x387   :  { %v962_v56 = vpop.f32.mrf.mxu2 }
 0x388   :  { %v991_v26 = vpack.c.bf16 %v962_v56, %v962_v56 }
 0x38a   :  { %v1037_v61 = vunpack.c.l.b16 %v991_v26 }
 0x38c   :  { %v1040_v63 = vpack.c.b16 %v1037_v61, %v1036_v59 }
 0x38e   :  { %1042 = vrot.lane.b32.xlu2 %v1040_v63, %s1510_s18 }
 0x396   :  { %1030 = vrot.lane.b32.xlu2 %v1027_v14, %s1509_s17 }
 0x3a3   :  { %v985_v6 = vpop.f32.mrf.mxu3 }
 0x3a4   :  { %v992_v44 = vpack.c.bf16 %v985_v6, %v985_v6 }
 0x3a6   :  { %v1038_v23 = vunpack.c.l.b16 %v992_v44 }
 0x3ab   :  { %v987_v45 = vpop.f32.mrf.mxu3 }
 0x3ac   :  { %v993_v50 = vpack.c.bf16 %v987_v45, %v987_v45 }
 0x3ae   :  { %v1039_v7 = vunpack.c.l.b16 %v993_v50 }
 0x3b0   :  { %v1041_v8 = vpack.c.b16 %v1039_v7, %v1038_v23 }
 0x3b2   :  { %1044 = vrot.lane.b32.xlu0 %v1041_v8, %s1510_s18 }
 0x3d0   :  { %v1029_v12 = vpop.permute.xlu2 %1028 }
 0x3d8   :  { %v1015_v15 = vpop.permute.xlu0 %1014 }
 0x3d9   :  { %v1048_v17 = vsel %vm346_vm0, %v1002_v22, %v1015_v15 }
 0x3da   :  { %v1053_v31 = vsel %vm393_vm1, %v1048_v17, %v1029_v12 }
 0x3e8   :  { %v1043_v49 = vpop.permute.xlu2 %1042  ;;  %v1017_v19 = vpop.permute.xlu1 %1016 }
 0x3e9   :  { %v1058_v46 = vsel %vm1056_vm2, %v1053_v31, %v1043_v49  ;;  %v1051_v28 = vsel %vm346_vm0, %v1003_v16, %v1017_v19 }
 0x3ea   :  { %1258 = vmatmul.msk.bf16.vlgmr.msrb.gmra.mxu0 %vm1081_vm3, %v1058_v46 }
 0x3f0   :  { %v1031_v22 = vpop.permute.xlu2 %1030 }
 0x3f1   :  { %v1055_v5 = vsel %vm393_vm1, %v1051_v28, %v1031_v22 }
 0x424   :  { %v1045_v29 = vpop.permute.xlu0 %1044 }
 0x425   :  { %v1060_v32 = vsel %vm1056_vm2, %v1055_v5, %v1045_v29 }
 0x426   :  { %1259 = vmatmul.msk.bf16.gmra.mxu0 %vm1081_vm3, %v1060_v32 }
 0x467   :  { %v1095_v35 = vpop.f32.mrf.mxu0 }
 0x468   :  { %v1096_v34 = vadd.f32 %v1304_v33, %v1095_v35 }
 0x46a   :  { %1105 = vst [vmem:[#allocation10] sm:$0xff] %v1096_v34 }
 0x46f   :  { %v1097_v36 = vpop.f32.mrf.mxu0 }
 0x470   :  { %v1098_v37 = vadd.f32 %v1304_v33, %v1097_v36 }
 0x472   :  { %1106 = vst [vmem:[#allocation10 + $0x8] sm:$0xff] %v1098_v37 }
 0x4a3   :  { %v1100_v57 = vpop.f32.mrf.mxu0 }
 0x4a4   :  { %v1101_v10 = vadd.f32 %v1304_v33, %v1100_v57 }
 0x4a6   :  { %1107 = vst [vmem:[#allocation10 + $0x10] sm:$0xff] %v1101_v10 }
 0x4ab   :  { %v1102_v38 = vpop.f32.mrf.mxu0 }
 0x4ac   :  { %v1103_v4 = vadd.f32 %v1304_v33, %v1102_v38 }
 0x4ae   :  { %1108 = vst [vmem:[#allocation10 + $0x18] sm:$0xff] %v1103_v4 }
 0x4af   :  { %1121 = dma.vmem_to_hbm [thread:$0]  %s1114_s22, 512, %s1116_s25, [#allocation4], %s1512_s4, %s1512_s4, %s1508_s16  }
 0x4b0   :  { %1495 = dma.done.wait [#allocation4], 512  }
 0x4b1   :  { %1496 = vsyncadd [#allocation4], 4294966784 }
 0x4b2   :  { %1126 = vsyncpa [#allocation3], 1 }
 0x4b3   :  { %1127 = vsyncpa [#allocation6], 1 }
 0x4b4   :  { %1128 = vsyncpa [#allocation9], 1 }
 0x4b5   :  { %1129 = vsyncpa [#allocation4], 1 }

// kernel: tpu_custom_call.1
= control target key start
LH: loop header
LB: loop body
LE: loop exit
PB: predicated region body
PF: predicated region fallthrough
CT: control target
= control target key end

     0   :  { %10 = vsyncpa [#allocation3], 0  ;;  %s1801_s0 = inlined_call_operand.hbm [shape: bf16[2,16,128], index: 0, kind: input, shape index: {}]   ;;  %s1802_s1 = inlined_call_operand.hbm [shape: bf16[128,384], index: 1, kind: input, shape index: {}]   ;;  %s1803_s2 = inlined_call_operand.hbm [shape: f32[1,384], index: 2, kind: input, shape index: {}]   ;;  %s1804_s3 = inlined_call_operand.hbm [shape: bf16[32,128], index: 3, kind: input, shape index: {}]   ;;  %s1805_s4 = inlined_call_operand.vmem [shape: f32[1,128], index: 4, kind: input, shape index: {}]   ;;  %s1806_s5 = inlined_call_operand.hbm [shape: f32[2,16,128], index: 5, kind: output, shape index: {}]  }
   0x1   :  { %11 = vsyncpa [#allocation6], 0 }
   0x2   :  { %12 = vsyncpa [#allocation9], 0  ;;  %s31_s20 = sshll.u32 %s1802_s1, 4  ;;  %s32_s20 = int_to_ptr.hbm [resolvable:$true] %s31_s20 }
   0x3   :  { %13 = vsyncpa [#allocation4], 0  ;;  %s1497_s21 = smov [#allocation5]   ;;  %s18_s25 = sshll.u32 %s1801_s0, 4  ;;  %s19_s25 = int_to_ptr.hbm [resolvable:$true] %s18_s25 }
   0x4   :  { %s33_s22 = sshll.u32 %s1497_s21, 4  ;;  %s1498_s26 = smov 192   ;;  %s34_s22 = int_to_ptr.vmem [resolvable:$true] %s33_s22 }
   0x5   :  { %s1499_s27 = smov 12   ;;  %s1500_s28 = smov [#allocation2]  }
   0x6   :  { %39 = dma.hbm_to_vmem [thread:$0]  %s32_s20, 3072, %s34_s22, [#allocation6], %s1498_s26, %s1498_s26, %s1499_s27  }
   0x7   :  { %s20_s29 = sshll.u32 %s1500_s28, 4  ;;  %s1501_s30 = smov 64   ;;  %s21_s29 = int_to_ptr.vmem [resolvable:$true] %s20_s29 }
   0x8   :  { %s1502_s6 = smov 4   ;;  %s45_s8 = sshll.u32 %s1803_s2, 4  ;;  %s46_s8 = int_to_ptr.hbm [resolvable:$true] %s45_s8 }
   0x9   :  { %26 = dma.hbm_to_vmem [thread:$0]  %s19_s25, 256, %s21_s29, [#allocation3], %s1501_s30, %s1501_s30, %s1502_s6  }
   0xa   :  { %s1503_s9 = smov [#allocation7]   ;;  %s55_s12 = sshll.u32 %s1804_s3, 4  ;;  %s56_s12 = int_to_ptr.hbm [resolvable:$true] %s55_s12 }
   0xb   :  { %s47_s10 = sshll.u32 %s1503_s9, 4  ;;  %s1504_s13 = smov [#allocation8]   ;;  %s48_s10 = int_to_ptr.vmem [resolvable:$true] %s47_s10 }
   0xc   :  { %50 = dma.hbm_to_vmem [thread:$0]  %s46_s8, 48, %s48_s10, [#allocation6]  }
   0xd   :  { %s57_s14 = sshll.u32 %s1504_s13, 4  ;;  %s58_s14 = int_to_ptr.vmem [resolvable:$true] %s57_s14 }
   0xe   :  { %63 = dma.hbm_to_vmem [thread:$0]  %s56_s12, 256, %s58_s14, [#allocation9], %s1501_s30, %s1501_s30, %s1502_s6  }
   0xf   :  { %1489 = dma.done.wait [#allocation3], 256  }
  0x10   :  { %1490 = vsyncadd [#allocation3], 4294967040 }
  0x11   :  { %1491 = dma.done.wait [#allocation6], 3120  }
  0x12   :  { %1492 = vsyncadd [#allocation6], 4294964176 }
  0x13   :  { %1493 = dma.done.wait [#allocation9], 256  }
  0x14   :  { %1494 = vsyncadd [#allocation9], 4294967040  ;;  %v1224_v0 = vld [vmem:[#allocation5 + $0xa8] sm:$0xf]  ;;  %v1284_v1 = vld [vmem:[#allocation5 + $0xb0] sm:$0xf0] }
  0x15   :  { %v1283_v2 = vld [vmem:[#allocation5 + $0xac] sm:$0xf]  ;;  %v1225_v3 = vor.u32 %v1284_v1, %v1224_v0  ;;  %v1226_v4 = vld [vmem:[#allocation5 + $0xb4] sm:$0xf0]  ;;  %v1212_v5 = vld [vmem:[#allocation5 + $0x90] sm:$0xf] }
  0x16   :  { %v1281_v6 = vld [vmem:[#allocation5 + $0x98] sm:$0xf0]  ;;  %v1229_v7 = vor.u32 %v1283_v2, %v1226_v4  ;;  %v1280_v8 = vld [vmem:[#allocation5 + $0x94] sm:$0xf]  ;;  %v1214_v9 = vld [vmem:[#allocation5 + $0x9c] sm:$0xf0] }
  0x17   :  { %267 = vmatpush.bf16.msra.mxu0 %v1225_v3  ;;  %v1213_v10 = vor.u32 %v1281_v6, %v1212_v5  ;;  %v1217_v11 = vor.u32 %v1280_v8, %v1214_v9  ;;  %v1200_v12 = vld [vmem:[#allocation5 + $0x78] sm:$0xf]  ;;  %v1278_v13 = vld [vmem:[#allocation5 + $0x80] sm:$0xf0]  ;;  %v1277_v14 = vld [vmem:[#allocation5 + $0x7c] sm:$0xf] }
  0x18   :  { %286 = vmatpush.bf16.msra.mxu1 %v1229_v7  ;;  %v1202_v15 = vld [vmem:[#allocation5 + $0x84] sm:$0xf0]  ;;  %v1201_v16 = vor.u32 %v1278_v13, %v1200_v12  ;;  %v1188_v18 = vld [vmem:[#allocation5 + $0x60] sm:$0xf]  ;;  %v1275_v19 = vld [vmem:[#allocation5 + $0x68] sm:$0xf0] }
  0x19   :  { %v1205_v17 = vor.u32 %v1277_v14, %v1202_v15  ;;  %v1274_v20 = vld [vmem:[#allocation5 + $0x64] sm:$0xf]  ;;  %v1190_v21 = vld [vmem:[#allocation5 + $0x6c] sm:$0xf0]  ;;  %v1189_v22 = vor.u32 %v1275_v19, %v1188_v18  ;;  %v1176_v24 = vld [vmem:[#allocation5 + $0x48] sm:$0xf] }
  0x1a   :  { %v1193_v23 = vor.u32 %v1274_v20, %v1190_v21  ;;  %v1272_v25 = vld [vmem:[#allocation5 + $0x50] sm:$0xf0]  ;;  %v1271_v26 = vld [vmem:[#allocation5 + $0x4c] sm:$0xf]  ;;  %v1178_v27 = vld [vmem:[#allocation5 + $0x54] sm:$0xf0] }
  0x1b   :  { %268 = vmatpush.bf16.msra.mxu0 %v1213_v10  ;;  %v1177_v28 = vor.u32 %v1272_v25, %v1176_v24  ;;  %v1181_v29 = vor.u32 %v1271_v26, %v1178_v27  ;;  %v1164_v30 = vld [vmem:[#allocation5 + $0x30] sm:$0xf]  ;;  %v1269_v31 = vld [vmem:[#allocation5 + $0x38] sm:$0xf0]  ;;  %v1268_v32 = vld [vmem:[#allocation5 + $0x34] sm:$0xf] }
  0x1c   :  { %287 = vmatpush.bf16.msra.mxu1 %v1217_v11  ;;  %v1166_v33 = vld [vmem:[#allocation5 + $0x3c] sm:$0xf0]  ;;  %v1165_v34 = vor.u32 %v1269_v31, %v1164_v30  ;;  %v1232_v35 = vld [vmem:[#allocation5 + $0xb0] sm:$0xf]  ;;  %v1285_v36 = vld [vmem:[#allocation5 + $0xb8] sm:$0xf0] }
  0x1d   :  { %v1220_v37 = vld [vmem:[#allocation5 + $0x98] sm:$0xf]  ;;  %v1169_v38 = vor.u32 %v1268_v32, %v1166_v33  ;;  %v1266_v40 = vld [vmem:[#allocation5 + $0x20] sm:$0xf0]  ;;  %v1233_v41 = vor.u32 %v1285_v36, %v1232_v35  ;;  %v1265_v43 = vld [vmem:[#allocation5 + $0x1c] sm:$0xf] }
  0x1e   :  { %v1152_v39 = vld [vmem:[#allocation5 + $0x18] sm:$0xf]  ;;  %v1282_v42 = vld [vmem:[#allocation5 + $0xa0] sm:$0xf0]  ;;  %v1154_v44 = vld [vmem:[#allocation5 + $0x24] sm:$0xf0] }
  0x1f   :  { %269 = vmatpush.bf16.msra.mxu0 %v1201_v16  ;;  %305 = vmatpush.bf16.msra.mxu2 %v1233_v41  ;;  %v1221_v45 = vor.u32 %v1282_v42, %v1220_v37  ;;  %v1153_v46 = vor.u32 %v1266_v40, %v1152_v39  ;;  %v1208_v47 = vld [vmem:[#allocation5 + $0x80] sm:$0xf]  ;;  %v1279_v48 = vld [vmem:[#allocation5 + $0x88] sm:$0xf0]  ;;  %v1157_v49 = vor.u32 %v1265_v43, %v1154_v44  ;;  %v1262_v52 = vld [vmem:[#allocation5 + $0x4] sm:$0xf] }
  0x20   :  { %288 = vmatpush.bf16.msra.mxu1 %v1205_v17  ;;  %v1140_v50 = vld [vmem:[#allocation5] sm:$0xf]  ;;  %v1263_v51 = vld [vmem:[#allocation5 + $0x8] sm:$0xf0]  ;;  %v1142_v53 = vld [vmem:[#allocation5 + $0xc] sm:$0xf0]  ;;  %v1209_v54 = vor.u32 %v1279_v48, %v1208_v47 }
  0x21   :  { %v1141_v55 = vor.u32 %v1263_v51, %v1140_v50  ;;  %v1196_v56 = vld [vmem:[#allocation5 + $0x68] sm:$0xf]  ;;  %v1276_v57 = vld [vmem:[#allocation5 + $0x70] sm:$0xf0]  ;;  %v1145_v58 = vor.u32 %v1262_v52, %v1142_v53  ;;  %v1184_v61 = vld [vmem:[#allocation5 + $0x50] sm:$0xf] }
  0x22   :  { %v1260_v59 = vld [vmem:[#allocation2] sm:$0xff]  ;;  %v1197_v60 = vor.u32 %v1276_v57, %v1196_v56  ;;  %v1273_v62 = vld [vmem:[#allocation5 + $0x58] sm:$0xf0]  ;;  %v1172_v0 = vld [vmem:[#allocation5 + $0x38] sm:$0xf]  ;;  %s1505_s2 = smov 112  }
  0x23   :  { %270 = vmatpush.bf16.msra.mxu0 %v1189_v22  ;;  %306 = vmatpush.bf16.msra.mxu2 %v1221_v45  ;;  %v1185_v63 = vor.u32 %v1273_v62, %v1184_v61  ;;  %v1270_v1 = vld [vmem:[#allocation5 + $0x40] sm:$0xf0]  ;;  %v1160_v3 = vld [vmem:[#allocation5 + $0x20] sm:$0xf]  ;;  %v1267_v4 = vld [vmem:[#allocation5 + $0x28] sm:$0xf0] }
  0x24   :  { %289 = vmatpush.bf16.msra.mxu1 %v1193_v23  ;;  %v1173_v2 = vor.u32 %v1270_v1, %v1172_v0  ;;  %v1161_v5 = vor.u32 %v1267_v4, %v1160_v3  ;;  %v1148_v6 = vld [vmem:[#allocation5 + $0x8] sm:$0xf]  ;;  %v1264_v7 = vld [vmem:[#allocation5 + $0x10] sm:$0xf0]  ;;  %v1261_v8 = vld [vmem:[#allocation2 + $0x8] sm:$0xff]  ;;  %s1506_s3 = smov 120  }
  0x25   :  { %v1149_v9 = vor.u32 %v1264_v7, %v1148_v6  ;;  %v1555_v10 = vld [vmem:[#allocation7] sm:$0x7]  ;;  %vm346_vm0 = vcmask 64512   ;;  %s1507_s15 = smov 104   ;;  %vm393_vm1 = vcmask 130048   ;;  %s1508_s16 = smov 8  }
  0x26   :  { %v121_v11 = vperm.slane %v1555_v10, 0  ;;  %v122_v12 = vperm.slane %v1555_v10, 1  ;;  %v123_v52 = vperm.slane %v1555_v10, 2  ;;  %s1509_s17 = smov 16   ;;  %s1510_s18 = smov 24   ;;  %vm1056_vm2 = vcmask 195584  }
  0x27   :  { %271 = vmatpush.bf16.msra.mxu0 %v1177_v28  ;;  %307 = vmatpush.bf16.msra.mxu2 %v1209_v54  ;;  %vm1081_vm3 = vcmask 261120   ;;  %s1511_s21 = smov [#allocation10]   ;;  %s1115_s25 = sshll.u32 %s1806_s5, 4  ;;  %s1116_s25 = int_to_ptr.hbm [resolvable:$true] %s1115_s25 }
  0x28   :  { %290 = vmatpush.bf16.msra.mxu1 %v1181_v29  ;;  %s1113_s22 = sshll.u32 %s1511_s21, 4  ;;  %s1114_s22 = int_to_ptr.vmem [resolvable:$true] %s1113_s22 }
  0x2b   :  { %272 = vmatpush.bf16.msra.mxu0 %v1165_v34  ;;  %308 = vmatpush.bf16.msra.mxu2 %v1197_v60 }
  0x2c   :  { %291 = vmatpush.bf16.msra.mxu1 %v1169_v38 }
  0x2f   :  { %273 = vmatpush.bf16.msra.mxu0 %v1153_v46  ;;  %309 = vmatpush.bf16.msra.mxu2 %v1185_v63 }
  0x30   :  { %292 = vmatpush.bf16.msra.mxu1 %v1157_v49 }
  0x33   :  { %274 = vmatpush.bf16.msra.mxu0 %v1141_v55  ;;  %310 = vmatpush.bf16.msra.mxu2 %v1173_v2 }
  0x34   :  { %293 = vmatpush.bf16.msra.mxu1 %v1145_v58 }
  0x36   :  { %275 = vmatmul.bf16.vlgmr.msra.gmra.mxu0 %v1260_v59 }
  0x37   :  { %294 = vmatmul.bf16.vlgmr.msra.gmra.mxu1 %v1260_v59  ;;  %311 = vmatpush.bf16.msra.mxu2 %v1161_v5 }
  0x3b   :  { %312 = vmatpush.bf16.msra.mxu2 %v1149_v9 }
  0x3e   :  { %313 = vmatmul.bf16.vlgmr.msra.gmra.mxu2 %v1260_v59 }
  0x46   :  { %280 = vmatmul.bf16.gmra.mxu0 %v1261_v8 }
  0x47   :  { %299 = vmatmul.bf16.gmra.mxu1 %v1261_v8 }
  0x4e   :  { %318 = vmatmul.bf16.gmra.mxu2 %v1261_v8 }
  0xb3   :  { %v276_v13 = vpop.f32.mrf.mxu0 }
  0xb4   :  { %v277_v14 = vadd.f32 %v276_v13, %v121_v11  ;;  %v295_v15 = vpop.f32.mrf.mxu1 }
  0xb5   :  { %v296_v16 = vadd.f32 %v295_v15, %v122_v12 }
  0xb7   :  { %v324_v17 = vpack.c.bf16 %v296_v16, %v277_v14 }
  0xb9   :  { %666 = vrot.lane.b32.xlu2 %v324_v17, %s1505_s2  ;;  %502 = vrot.lane.b32.xlu0 %v324_v17, %s1506_s3  ;;  %v336_v23 = vrot.slane %v324_v17, 4  ;;  %v340_v24 = vunpack.c.l.b16 %v324_v17 }
  0xbb   :  { %v278_v18 = vpop.f32.mrf.mxu0  ;;  %v343_v29 = vunpack.c.l.b16 %v336_v23 }
  0xbc   :  { %v279_v19 = vadd.f32 %v278_v18, %v121_v11  ;;  %v297_v20 = vpop.f32.mrf.mxu1 }
  0xbd   :  { %v298_v21 = vadd.f32 %v297_v20, %v122_v12 }
  0xbf   :  { %v326_v22 = vpack.c.bf16 %v298_v21, %v279_v19 }
  0xc1   :  { %504 = vrot.lane.b32.xlu0 %v326_v22, %s1506_s3  ;;  %v341_v25 = vunpack.c.l.b16 %v326_v22  ;;  %v337_v26 = vrot.slane %v326_v22, 4  ;;  %v314_v51 = vpop.f32.mrf.mxu2 }
  0xc2   :  { %v315_v53 = vadd.f32 %v314_v51, %v123_v52 }
  0xc3   :  { %v281_v27 = vpop.f32.mrf.mxu0  ;;  %v342_v28 = vpack.c.b16 %v341_v25, %v340_v24  ;;  %v344_v30 = vunpack.c.l.b16 %v337_v26 }
  0xc4   :  { %v300_v31 = vpop.f32.mrf.mxu1  ;;  %v282_v32 = vadd.f32 %v281_v27, %v121_v11  ;;  %v325_v54 = vpack.c.bf16 %v315_v53, %v315_v53 }
  0xc5   :  { %v301_v33 = vadd.f32 %v300_v31, %v122_v12  ;;  %514 = vrot.lane.b32.xlu1 %v342_v28, %s1506_s3  ;;  %v345_v34 = vpack.c.b16 %v344_v30, %v343_v29 }
  0xc6   :  { %v449_v57 = vunpack.c.l.b16 %v325_v54 }
  0xc7   :  { %v351_v35 = vsel %vm346_vm0, %v345_v34, 0  ;;  %v328_v36 = vpack.c.bf16 %v301_v33, %v282_v32 }
  0xc8   :  { %360 = vmatpush.bf16.xpose.msra.mxu3 %v351_v35 }
  0xc9   :  { %668 = vrot.lane.b32.xlu0 %v326_v22, %s1505_s2  ;;  %v338_v41 = vrot.slane %v328_v36, 4  ;;  %v367_v43 = vunpack.c.l.b16 %v328_v36  ;;  %v316_v55 = vpop.f32.mrf.mxu2 }
  0xca   :  { %v317_v56 = vadd.f32 %v316_v55, %v123_v52 }
  0xcb   :  { %v283_v37 = vpop.f32.mrf.mxu0  ;;  %v370_v46 = vunpack.c.l.b16 %v338_v41 }
  0xcc   :  { %v284_v38 = vadd.f32 %v283_v37, %v121_v11  ;;  %v302_v39 = vpop.f32.mrf.mxu1  ;;  %v327_v58 = vpack.c.bf16 %v317_v56, %v317_v56 }
  0xcd   :  { %v303_v40 = vadd.f32 %v302_v39, %v122_v12  ;;  %506 = vrot.lane.b32.xlu1 %v328_v36, %s1506_s3 }
  0xce   :  { %v450_v59 = vunpack.c.l.b16 %v327_v58 }
  0xcf   :  { %v330_v42 = vpack.c.bf16 %v303_v40, %v284_v38  ;;  %1234 = vmatmul.msk.bf16.vlgmr.msra.gmra.mxu3 %vm346_vm0, %v342_v28 }
  0xd0   :  { %v1582_v60 = vpack.c.b16 %v450_v59, %v449_v57 }
  0xd1   :  { %508 = vrot.lane.b32.xlu2 %v330_v42, %s1506_s3  ;;  %670 = vrot.lane.b32.xlu0 %v328_v36, %s1505_s2  ;;  %v368_v44 = vunpack.c.l.b16 %v330_v42  ;;  %v339_v45 = vrot.slane %v330_v42, 4  ;;  %v319_v61 = vpop.f32.mrf.mxu2 }
  0xd2   :  { %v320_v62 = vadd.f32 %v319_v61, %v123_v52 }
  0xd3   :  { %v369_v47 = vpack.c.b16 %v368_v44, %v367_v43  ;;  %v371_v48 = vunpack.c.l.b16 %v339_v45 }
  0xd4   :  { %v329_v63 = vpack.c.bf16 %v320_v62, %v320_v62 }
  0xd5   :  { %539 = vrot.lane.b32.xlu1 %v369_v47, %s1506_s3  ;;  %v372_v49 = vpack.c.b16 %v371_v48, %v370_v46 }
  0xd6   :  { %v477_v2 = vunpack.c.l.b16 %v329_v63 }
  0xd7   :  { %v377_v50 = vsel %vm346_vm0, %v372_v49, 0 }
  0xd8   :  { %386 = vmatpush.bf16.xpose.msrb.mxu3 %v377_v50 }
  0xd9   :  { %832 = vrot.lane.b32.xlu0 %v326_v22, %s1507_s15  ;;  %678 = vrot.lane.b32.xlu2 %v342_v28, %s1505_s2  ;;  %v321_v0 = vpop.f32.mrf.mxu2 }
  0xda   :  { %v322_v1 = vadd.f32 %v321_v0, %v123_v52 }
  0xdc   :  { %v331_v3 = vpack.c.bf16 %v322_v1, %v322_v1 }
  0xdd   :  { %672 = vrot.lane.b32.xlu1 %v330_v42, %s1505_s2 }
  0xde   :  { %v478_v4 = vunpack.c.l.b16 %v331_v3 }
  0xdf   :  { %1235 = vmatmul.msk.bf16.vlgmr.msrb.gmra.mxu3 %vm346_vm0, %v369_v47 }
  0xe0   :  { %463 = vmatpush.bf16.msra.mxu3 %v1582_v60  ;;  %v1587_v5 = vpack.c.b16 %v478_v4, %v477_v2 }
  0xe1   :  { %830 = vrot.lane.b32.xlu2 %v324_v17, %s1507_s15  ;;  %834 = vrot.lane.b32.xlu0 %v328_v36, %s1507_s15 }
  0xe4   :  { %491 = vmatpush.bf16.msrb.mxu3 %v1587_v5 }
  0xe5   :  { %703 = vrot.lane.b32.xlu1 %v369_v47, %s1505_s2 }
  0xe9   :  { %842 = vrot.lane.b32.xlu2 %v342_v28, %s1507_s15  ;;  %617 = vrot.lane.b32.xlu0 %v1582_v60, %s1506_s3 }
  0xed   :  { %836 = vrot.lane.b32.xlu1 %v330_v42, %s1507_s15 }
  0xf1   :  { %867 = vrot.lane.b32.xlu2 %v369_v47, %s1507_s15 }
  0xf5   :  { %642 = vrot.lane.b32.xlu1 %v1587_v5, %s1506_s3 }
 0x113   :  { %v667_v6 = vpop.permute.xlu2 %666 }
 0x114   :  { %v674_v16 = vrot.slane %v667_v6, 4 }
 0x116   :  { %v680_v21 = vunpack.c.l.b16 %v674_v16 }
 0x12b   :  { %v503_v7 = vpop.permute.xlu0 %502  ;;  %v509_v9 = vpop.permute.xlu2 %508 }
 0x12c   :  { %v510_v8 = vrot.slane %v503_v7, 4  ;;  %v513_v22 = vrot.slane %v509_v9, 4 }
 0x12e   :  { %v516_v12 = vunpack.c.l.b16 %v510_v8  ;;  %v542_v27 = vunpack.c.l.b16 %v513_v22 }
 0x133   :  { %v505_v10 = vpop.permute.xlu0 %504  ;;  %v679_v20 = vpop.permute.xlu2 %678 }
 0x134   :  { %v511_v11 = vrot.slane %v505_v10, 4 }
 0x136   :  { %v517_v13 = vunpack.c.l.b16 %v511_v11 }
 0x137   :  { %v515_v14 = vpop.permute.xlu1 %514 }
 0x138   :  { %v518_v15 = vpack.c.b16 %v517_v13, %v516_v12 }
 0x13a   :  { %v523_v17 = vsel %vm346_vm0, %v518_v15, 0 }
 0x13b   :  { %532 = vmatpush.bf16.xpose.msrb.mxu1 %v523_v17  ;;  %v669_v18 = vpop.permute.xlu0 %668  ;;  %v831_v33 = vpop.permute.xlu2 %830 }
 0x13c   :  { %v675_v19 = vrot.slane %v669_v18, 4  ;;  %v838_v35 = vrot.slane %v831_v33, 4 }
 0x13e   :  { %v681_v23 = vunpack.c.l.b16 %v675_v19  ;;  %v844_v38 = vunpack.c.l.b16 %v838_v35 }
 0x13f   :  { %v507_v24 = vpop.permute.xlu1 %506 }
 0x140   :  { %v512_v25 = vrot.slane %v507_v24, 4  ;;  %v682_v26 = vpack.c.b16 %v681_v23, %v680_v21 }
 0x142   :  { %v541_v28 = vunpack.c.l.b16 %v512_v25  ;;  %1238 = vmatmul.msk.bf16.vlgmr.msrb.gmra.mxu1 %vm346_vm0, %v515_v14  ;;  %v687_v29 = vsel %vm346_vm0, %v682_v26, 0 }
 0x143   :  { %696 = vmatpush.bf16.xpose.msrb.mxu0 %v687_v29  ;;  %v671_v30 = vpop.permute.xlu0 %670  ;;  %v843_v52 = vpop.permute.xlu2 %842 }
 0x144   :  { %v543_v31 = vpack.c.b16 %v542_v27, %v541_v28  ;;  %v676_v39 = vrot.slane %v671_v30, 4 }
 0x146   :  { %v548_v32 = vsel %vm346_vm0, %v543_v31, 0  ;;  %v705_v44 = vunpack.c.l.b16 %v676_v39 }
 0x147   :  { %v540_v34 = vpop.permute.xlu1 %539  ;;  %557 = vmatpush.bf16.xpose.msra.mxu1 %v548_v32 }
 0x14a   :  { %1242 = vmatmul.msk.bf16.vlgmr.msrb.gmra.mxu0 %vm346_vm0, %v679_v20 }
 0x14b   :  { %v833_v36 = vpop.permute.xlu0 %832  ;;  %v868_v4 = vpop.permute.xlu2 %867 }
 0x14c   :  { %v839_v37 = vrot.slane %v833_v36, 4 }
 0x14e   :  { %v845_v40 = vunpack.c.l.b16 %v839_v37 }
 0x14f   :  { %v673_v41 = vpop.permute.xlu1 %672 }
 0x150   :  { %v846_v42 = vpack.c.b16 %v845_v40, %v844_v38  ;;  %v677_v43 = vrot.slane %v673_v41, 4 }
 0x152   :  { %v706_v45 = vunpack.c.l.b16 %v677_v43  ;;  %v362_v46 = vpop.f32.mrf.mxu3  ;;  %1239 = vmatmul.msk.bf16.vlgmr.msra.gmra.mxu1 %vm346_vm0, %v540_v34  ;;  %v851_v47 = vsel %vm346_vm0, %v846_v42, 0 }
 0x153   :  { %860 = vmatpush.bf16.xpose.msra.mxu0 %v851_v47  ;;  %v394_v48 = vsel %vm393_vm1, %v362_v46, -inf  ;;  %v835_v54 = vpop.permute.xlu0 %834 }
 0x154   :  { %v707_v49 = vpack.c.b16 %v706_v45, %v705_v44  ;;  %395 = vmax.xlane.f32.xlu0 %v394_v48  ;;  %v840_v56 = vrot.slane %v835_v54, 4 }
 0x156   :  { %v712_v50 = vsel %vm346_vm0, %v707_v49, 0  ;;  %v869_v59 = vunpack.c.l.b16 %v840_v56 }
 0x157   :  { %v704_v51 = vpop.permute.xlu1 %703  ;;  %721 = vmatpush.bf16.xpose.msrb.mxu1 %v712_v50 }
 0x15a   :  { %v364_v53 = vpop.f32.mrf.mxu3  ;;  %1246 = vmatmul.msk.bf16.vlgmr.msra.gmra.mxu0 %vm346_vm0, %v843_v52 }
 0x15b   :  { %v397_v55 = vsel %vm393_vm1, %v364_v53, -inf  ;;  %v618_v6 = vpop.permute.xlu0 %617 }
 0x15c   :  { %398 = vmax.xlane.f32.xlu1 %v397_v55  ;;  %630 = vmatpush.bf16.msrb.mxu2 %v618_v6 }
 0x15f   :  { %v837_v57 = vpop.permute.xlu1 %836 }
 0x160   :  { %v841_v58 = vrot.slane %v837_v57, 4 }
 0x162   :  { %v870_v61 = vunpack.c.l.b16 %v841_v58  ;;  %v388_v62 = vpop.f32.mrf.mxu3  ;;  %1243 = vmatmul.msk.bf16.vlgmr.msrb.gmra.mxu1 %vm346_vm0, %v704_v51 }
 0x163   :  { %v400_v63 = vsel %vm393_vm1, %v388_v62, -inf }
 0x164   :  { %v871_v0 = vpack.c.b16 %v870_v61, %v869_v59  ;;  %401 = vmax.xlane.f32.xlu2 %v400_v63 }
 0x166   :  { %v876_v1 = vsel %vm346_vm0, %v871_v0, 0 }
 0x167   :  { %885 = vmatpush.bf16.xpose.msra.mxu1 %v876_v1  ;;  %v1618_v14 = vpop.permute.xlu1 %642 }
 0x16a   :  { %v390_v2 = vpop.f32.mrf.mxu3 }
 0x16b   :  { %v403_v3 = vsel %vm393_vm1, %v390_v2, -inf }
 0x16c   :  { %404 = vmax.xlane.f32.xlu2 %v403_v3 }
 0x172   :  { %1247 = vmatmul.msk.bf16.vlgmr.msra.gmra.mxu1 %vm346_vm0, %v868_v4 }
 0x1bf   :  { %v1608_v7 = vpop.f32.mrf.mxu1 }
 0x1c0   :  { %v564_v8 = vsel %vm393_vm1, %v1608_v7, -inf }
 0x1c1   :  { %565 = vmax.xlane.f32.xlu0 %v564_v8 }
 0x1c7   :  { %v1612_v9 = vpop.f32.mrf.mxu1  ;;  %v1614_v10 = vpop.f32.mrf.mxu0 }
 0x1c8   :  { %v396_v11 = vpop.xlane.xlu0 %395  ;;  %v728_v12 = vsel %vm393_vm1, %v1614_v10, -inf  ;;  %v567_v18 = vsel %vm393_vm1, %v1612_v9, -inf }
 0x1c9   :  { %v406_v13 = vsub.f32 %v362_v46, %v396_v11  ;;  %729 = vmax.xlane.f32.xlu1 %v728_v12 }
 0x1cb   :  { %v410_v15 = vmul.f32 1.442695, %v406_v13 }
 0x1cd   :  { %1305 = vpow2.f32 %v410_v15 }
 0x1cf   :  { %v1620_v16 = vpop.f32.mrf.mxu1  ;;  %v1622_v17 = vpop.f32.mrf.mxu0 }
 0x1d0   :  { %v731_v19 = vsel %vm393_vm1, %v1622_v17, -inf  ;;  %v399_v21 = vpop.xlane.xlu1 %398  ;;  %v570_v28 = vsel %vm393_vm1, %v1620_v16, -inf }
 0x1d1   :  { %568 = vmax.xlane.f32.xlu1 %v567_v18  ;;  %732 = vmax.xlane.f32.xlu2 %v731_v19  ;;  %v407_v24 = vsub.f32 %v364_v53, %v399_v21 }
 0x1d3   :  { %v1628_v20 = vpop.eup %1305  ;;  %v412_v29 = vmul.f32 1.442695, %v407_v24 }
 0x1d4   :  { %v418_v27 = vsel %vm393_vm1, %v1628_v20, 0.0 }
 0x1d5   :  { %1307 = vpow2.f32 %v412_v29 }
 0x1d7   :  { %v1630_v22 = vpop.f32.mrf.mxu1  ;;  %v1632_v23 = vpop.f32.mrf.mxu0 }
 0x1d8   :  { %v402_v25 = vpop.xlane.xlu2 %401  ;;  %v573_v26 = vsel %vm393_vm1, %v1630_v22, -inf  ;;  %v892_v36 = vsel %vm393_vm1, %v1632_v23, -inf }
 0x1d9   :  { %574 = vmax.xlane.f32.xlu0 %v573_v26  ;;  %419 = vadd.xlane.f32.xlu1 %v418_v27  ;;  %v408_v32 = vsub.f32 %v388_v62, %v402_v25 }
 0x1da   :  { %571 = vmax.xlane.f32.xlu2 %v570_v28 }
 0x1db   :  { %v414_v38 = vmul.f32 1.442695, %v408_v32  ;;  %v1648_v39 = vpop.eup %1307 }
 0x1dc   :  { %v421_v43 = vsel %vm393_vm1, %v1648_v39, 0.0 }
 0x1df   :  { %v1640_v30 = vpop.f32.mrf.mxu1  ;;  %v1642_v31 = vpop.f32.mrf.mxu0 }
 0x1e0   :  { %v405_v33 = vpop.xlane.xlu2 %404  ;;  %v895_v34 = vsel %vm393_vm1, %v1642_v31, -inf  ;;  %v734_v41 = vsel %vm393_vm1, %v1640_v30, -inf }
 0x1e1   :  { %v409_v35 = vsub.f32 %v390_v2, %v405_v33  ;;  %896 = vmax.xlane.f32.xlu0 %v895_v34 }
 0x1e2   :  { %893 = vmax.xlane.f32.xlu2 %v892_v36 }
 0x1e3   :  { %v416_v37 = vmul.f32 1.442695, %v409_v35 }
 0x1e5   :  { %1309 = vpow2.f32 %v416_v37 }
 0x1e6   :  { %1311 = vpow2.f32 %v414_v38 }
 0x1e7   :  { %v1650_v40 = vpop.f32.mrf.mxu1 }
 0x1e8   :  { %v737_v42 = vsel %vm393_vm1, %v1650_v40, -inf }
 0x1e9   :  { %735 = vmax.xlane.f32.xlu0 %v734_v41  ;;  %738 = vmax.xlane.f32.xlu1 %v737_v42 }
 0x1ea   :  { %422 = vadd.xlane.f32.xlu2 %v421_v43 }
 0x1eb   :  { %v1658_v44 = vpop.eup %1309 }
 0x1ec   :  { %v1660_v45 = vpop.eup %1311  ;;  %v427_v47 = vsel %vm393_vm1, %v1658_v44, 0.0 }
 0x1ed   :  { %v424_v48 = vsel %vm393_vm1, %v1660_v45, 0.0 }
 0x1ef   :  { %v1662_v46 = vpop.f32.mrf.mxu1 }
 0x1f0   :  { %v898_v51 = vsel %vm393_vm1, %v1662_v46, -inf }
 0x1f1   :  { %428 = vadd.xlane.f32.xlu0 %v427_v47 }
 0x1f2   :  { %425 = vadd.xlane.f32.xlu2 %v424_v48 }
 0x1f7   :  { %v1668_v49 = vpop.f32.mrf.mxu1 }
 0x1f8   :  { %v901_v50 = vsel %vm393_vm1, %v1668_v49, -inf }
 0x1f9   :  { %902 = vmax.xlane.f32.xlu1 %v901_v50  ;;  %899 = vmax.xlane.f32.xlu0 %v898_v51 }
 0x20d   :  { %781 = vrot.lane.b32.xlu0 %v1582_v60, %s1505_s2 }
 0x234   :  { %v566_v52 = vpop.xlane.xlu0 %565 }
 0x235   :  { %v576_v53 = vsub.f32 %v1608_v7, %v566_v52 }
 0x237   :  { %v580_v54 = vmul.f32 1.442695, %v576_v53 }
 0x239   :  { %1313 = vpow2.f32 %v580_v54 }
 0x23c   :  { %v730_v55 = vpop.xlane.xlu1 %729 }
 0x23d   :  { %v740_v56 = vsub.f32 %v1614_v10, %v730_v55 }
 0x23f   :  { %v1678_v57 = vpop.eup %1313  ;;  %v744_v58 = vmul.f32 1.442695, %v740_v56 }
 0x240   :  { %v588_v59 = vsel %vm393_vm1, %v1678_v57, 0.0 }
 0x241   :  { %1315 = vpow2.f32 %v744_v58  ;;  %589 = vadd.xlane.f32.xlu1 %v588_v59 }
 0x244   :  { %v569_v61 = vpop.xlane.xlu1 %568  ;;  %v733_v62 = vpop.xlane.xlu2 %732 }
 0x245   :  { %v577_v63 = vsub.f32 %v1612_v9, %v569_v61  ;;  %v741_v2 = vsub.f32 %v1622_v17, %v733_v62 }
 0x247   :  { %v1683_v0 = vpop.eup %1315  ;;  %v582_v1 = vmul.f32 1.442695, %v577_v63  ;;  %v746_v4 = vmul.f32 1.442695, %v741_v2 }
 0x248   :  { %v752_v3 = vsel %vm393_vm1, %v1683_v0, 0.0 }
 0x249   :  { %1317 = vpow2.f32 %v582_v1  ;;  %753 = vadd.xlane.f32.xlu1 %v752_v3 }
 0x24a   :  { %1319 = vpow2.f32 %v746_v4 }
 0x24c   :  { %v575_v6 = vpop.xlane.xlu0 %574  ;;  %v420_v15 = vpop.xlane.xlu1 %419 }
 0x24d   :  { %v572_v7 = vpop.xlane.xlu2 %571  ;;  %v579_v9 = vsub.f32 %v1630_v22, %v575_v6 }
 0x24e   :  { %v578_v8 = vsub.f32 %v1620_v16, %v572_v7 }
 0x24f   :  { %v1689_v10 = vpop.eup %1317  ;;  %v586_v13 = vmul.f32 1.442695, %v579_v9 }
 0x250   :  { %v584_v11 = vmul.f32 1.442695, %v578_v8  ;;  %v591_v12 = vsel %vm393_vm1, %v1689_v10, 0.0  ;;  %v1694_v18 = vpop.eup %1319 }
 0x251   :  { %592 = vadd.xlane.f32.xlu2 %v591_v12  ;;  %v755_v16 = vsel %vm393_vm1, %v1694_v18, 0.0 }
 0x252   :  { %1321 = vpow2.f32 %v584_v11 }
 0x253   :  { %1323 = vpow2.f32 %v586_v13 }
 0x254   :  { %v897_v17 = vpop.xlane.xlu0 %896  ;;  %1325 = vrcp.f32 %v420_v15 }
 0x255   :  { %v894_v19 = vpop.xlane.xlu2 %893  ;;  %v905_v47 = vsub.f32 %v1642_v31, %v897_v17 }
 0x256   :  { %v904_v33 = vsub.f32 %v1632_v23, %v894_v19 }
 0x257   :  { %v910_v54 = vmul.f32 1.442695, %v905_v47 }
 0x258   :  { %v1696_v21 = vpop.eup %1321  ;;  %v908_v38 = vmul.f32 1.442695, %v904_v33 }
 0x259   :  { %756 = vadd.xlane.f32.xlu2 %v755_v16  ;;  %v594_v22 = vsel %vm393_vm1, %v1696_v21, 0.0  ;;  %v1702_v26 = vpop.eup %1323 }
 0x25a   :  { %595 = vadd.xlane.f32.xlu1 %v594_v22  ;;  %v1326_v32 = vpop.eup %1325  ;;  %v597_v36 = vsel %vm393_vm1, %v1702_v26, 0.0 }
 0x25b   :  { %v434_v37 = vmul.f32 %v1326_v32, %v1628_v20 }
 0x25c   :  { %v736_v24 = vpop.xlane.xlu0 %735  ;;  %v739_v25 = vpop.xlane.xlu1 %738 }
 0x25d   :  { %v742_v27 = vsub.f32 %v1640_v30, %v736_v24  ;;  %v743_v28 = vsub.f32 %v1650_v40, %v739_v25  ;;  %v423_v29 = vpop.xlane.xlu2 %422  ;;  %v438_v42 = vpack.c.bf16 %v434_v37, %v434_v37 }
 0x25e   :  { %1327 = vrcp.f32 %v423_v29 }
 0x25f   :  { %v748_v34 = vmul.f32 1.442695, %v742_v27  ;;  %v750_v35 = vmul.f32 1.442695, %v743_v28  ;;  %v444_v51 = vunpack.c.l.b16 %v438_v42 }
 0x261   :  { %1329 = vpow2.f32 %v748_v34  ;;  %598 = vadd.xlane.f32.xlu2 %v597_v36 }
 0x262   :  { %1331 = vpow2.f32 %v750_v35 }
 0x264   :  { %v1328_v41 = vpop.eup %1327  ;;  %v429_v30 = vpop.xlane.xlu0 %428 }
 0x265   :  { %v435_v40 = vmul.f32 %v1328_v41, %v1648_v39  ;;  %1333 = vrcp.f32 %v429_v30  ;;  %v426_v43 = vpop.xlane.xlu2 %425 }
 0x266   :  { %1335 = vrcp.f32 %v426_v43 }
 0x267   :  { %v1711_v23 = vpop.eup %1329  ;;  %1337 = vpow2.f32 %v908_v38  ;;  %v439_v48 = vpack.c.bf16 %v435_v40, %v435_v40 }
 0x268   :  { %v1714_v50 = vpop.eup %1331  ;;  %v758_v20 = vsel %vm393_vm1, %v1711_v23, 0.0  ;;  %1339 = vpow2.f32 %v910_v54 }
 0x269   :  { %v445_v52 = vunpack.c.l.b16 %v439_v48  ;;  %v761_v53 = vsel %vm393_vm1, %v1714_v50, 0.0  ;;  %759 = vadd.xlane.f32.xlu2 %v758_v20 }
 0x26a   :  { %762 = vadd.xlane.f32.xlu0 %v761_v53 }
 0x26b   :  { %v1334_v39 = vpop.eup %1333  ;;  %v446_v55 = vpack.c.b16 %v445_v52, %v444_v51 }
 0x26c   :  { %v1336_v56 = vpop.eup %1335  ;;  %v903_v58 = vpop.xlane.xlu1 %902  ;;  %v437_v61 = vmul.f32 %v1334_v39, %v1658_v44 }
 0x26d   :  { %v1720_v31 = vpop.eup %1337  ;;  %v907_v59 = vsub.f32 %v1668_v49, %v903_v58  ;;  %1236 = vmatmul.msk.bf16.vlgmr.msra.gmra.mxu3 %vm393_vm1, %v446_v55  ;;  %v436_v62 = vmul.f32 %v1336_v56, %v1660_v45  ;;  %v900_v44 = vpop.xlane.xlu0 %899 }
 0x26e   :  { %655 = vmatpush.bf16.msra.mxu3 %v1618_v14  ;;  %v916_v1 = vsel %vm393_vm1, %v1720_v31, 0.0  ;;  %v441_v2 = vpack.c.bf16 %v437_v61, %v437_v61  ;;  %v1731_v49 = vpop.eup %1339  ;;  %v906_v11 = vsub.f32 %v1662_v46, %v900_v44 }
 0x26f   :  { %v914_v63 = vmul.f32 1.442695, %v907_v59  ;;  %v440_v3 = vpack.c.bf16 %v436_v62, %v436_v62  ;;  %v919_v7 = vsel %vm393_vm1, %v1731_v49, 0.0 }
 0x270   :  { %v473_v14 = vunpack.c.l.b16 %v441_v2  ;;  %v912_v12 = vmul.f32 1.442695, %v906_v11 }
 0x271   :  { %1341 = vpow2.f32 %v914_v63  ;;  %917 = vadd.xlane.f32.xlu2 %v916_v1  ;;  %v472_v6 = vunpack.c.l.b16 %v440_v3 }
 0x272   :  { %1343 = vpow2.f32 %v912_v12 }
 0x273   :  { %806 = vrot.lane.b32.xlu1 %v1587_v5, %s1505_s2  ;;  %v474_v8 = vpack.c.b16 %v473_v14, %v472_v6 }
 0x277   :  { %v1733_v4 = vpop.eup %1341 }
 0x278   :  { %v925_v45 = vsel %vm393_vm1, %v1733_v4, 0.0  ;;  %v1743_v13 = vpop.eup %1343 }
 0x279   :  { %926 = vadd.xlane.f32.xlu0 %v925_v45  ;;  %920 = vadd.xlane.f32.xlu2 %v919_v7  ;;  %v922_v15 = vsel %vm393_vm1, %v1743_v13, 0.0 }
 0x27d   :  { %1237 = vmatmul.msk.bf16.vlgmr.msrb.gmra.mxu3 %vm393_vm1, %v474_v8 }
 0x27f   :  { %v782_v9 = vpop.permute.xlu0 %781 }
 0x280   :  { %794 = vmatpush.bf16.msra.mxu2 %v782_v9 }
 0x291   :  { %945 = vrot.lane.b32.xlu2 %v1582_v60, %s1507_s15 }
 0x299   :  { %970 = vrot.lane.b32.xlu2 %v1587_v5, %s1507_s15 }
 0x29d   :  { %923 = vadd.xlane.f32.xlu1 %v922_v15 }
 0x2b4   :  { %v590_v17 = vpop.xlane.xlu1 %589 }
 0x2b5   :  { %1345 = vrcp.f32 %v590_v17 }
 0x2bb   :  { %v1346_v16 = vpop.eup %1345 }
 0x2bc   :  { %v754_v22 = vpop.xlane.xlu1 %753  ;;  %v604_v46 = vmul.f32 %v1346_v16, %v1678_v57 }
 0x2be   :  { %v608_v60 = vpack.c.bf16 %v604_v46, %v604_v46 }
 0x2c0   :  { %v614_v29 = vunpack.c.l.b16 %v608_v60 }
 0x2c4   :  { %v593_v19 = vpop.xlane.xlu2 %592 }
 0x2c5   :  { %1347 = vrcp.f32 %v593_v19 }
 0x2cb   :  { %v1348_v24 = vpop.eup %1347 }
 0x2cc   :  { %v605_v25 = vmul.f32 %v1348_v24, %v1689_v10  ;;  %v757_v27 = vpop.xlane.xlu2 %756 }
 0x2cd   :  { %v596_v28 = vpop.xlane.xlu1 %595  ;;  %1349 = vrcp.f32 %v757_v27 }
 0x2ce   :  { %1351 = vrcp.f32 %v754_v22  ;;  %v609_v5 = vpack.c.bf16 %v605_v25, %v605_v25 }
 0x2cf   :  { %1353 = vrcp.f32 %v596_v28 }
 0x2d0   :  { %v615_v32 = vunpack.c.l.b16 %v609_v5 }
 0x2d2   :  { %v616_v33 = vpack.c.b16 %v615_v32, %v614_v29 }
 0x2d3   :  { %v1350_v34 = vpop.eup %1349 }
 0x2d4   :  { %v1352_v35 = vpop.eup %1351  ;;  %1240 = vmatmul.msk.bf16.vlgmr.msrb.gmra.mxu2 %vm393_vm1, %v616_v33  ;;  %v599_v36 = vpop.xlane.xlu2 %598  ;;  %v769_v57 = vmul.f32 %v1350_v34, %v1694_v18 }
 0x2d5   :  { %v1354_v37 = vpop.eup %1353  ;;  %1355 = vrcp.f32 %v599_v36  ;;  %v768_v10 = vmul.f32 %v1352_v35, %v1683_v0 }
 0x2d6   :  { %v606_v38 = vmul.f32 %v1354_v37, %v1696_v21  ;;  %v773_v41 = vpack.c.bf16 %v769_v57, %v769_v57 }
 0x2d7   :  { %v772_v42 = vpack.c.bf16 %v768_v10, %v768_v10 }
 0x2d8   :  { %v610_v40 = vpack.c.bf16 %v606_v38, %v606_v38  ;;  %v779_v20 = vunpack.c.l.b16 %v773_v41 }
 0x2d9   :  { %v778_v52 = vunpack.c.l.b16 %v772_v42 }
 0x2da   :  { %v639_v53 = vunpack.c.l.b16 %v610_v40 }
 0x2db   :  { %v1356_v30 = vpop.eup %1355  ;;  %v780_v18 = vpack.c.b16 %v779_v20, %v778_v52 }
 0x2dc   :  { %v607_v43 = vmul.f32 %v1356_v30, %v1702_v26  ;;  %v760_v47 = vpop.xlane.xlu2 %759 }
 0x2dd   :  { %v763_v48 = vpop.xlane.xlu0 %762  ;;  %1357 = vrcp.f32 %v760_v47 }
 0x2de   :  { %v611_v51 = vpack.c.bf16 %v607_v43, %v607_v43  ;;  %1359 = vrcp.f32 %v763_v48 }
 0x2e0   :  { %v640_v39 = vunpack.c.l.b16 %v611_v51 }
 0x2e2   :  { %v641_v54 = vpack.c.b16 %v640_v39, %v639_v53 }
 0x2e3   :  { %v1358_v0 = vpop.eup %1357 }
 0x2e4   :  { %v1360_v55 = vpop.eup %1359  ;;  %1241 = vmatmul.msk.bf16.vlgmr.msra.gmra.mxu3 %vm393_vm1, %v641_v54  ;;  %1244 = vmatmul.msk.bf16.vlgmr.msra.gmra.mxu2 %vm393_vm1, %v780_v18  ;;  %v918_v21 = vpop.xlane.xlu2 %917  ;;  %v770_v58 = vmul.f32 %v1358_v0, %v1711_v23 }
 0x2e5   :  { %v807_v56 = vpop.permute.xlu1 %806  ;;  %v771_v26 = vmul.f32 %v1360_v55, %v1714_v50  ;;  %1361 = vrcp.f32 %v918_v21 }
 0x2e6   :  { %819 = vmatpush.bf16.msrb.mxu3 %v807_v56  ;;  %v774_v61 = vpack.c.bf16 %v770_v58, %v770_v58 }
 0x2e7   :  { %v775_v59 = vpack.c.bf16 %v771_v26, %v771_v26 }
 0x2e8   :  { %v803_v2 = vunpack.c.l.b16 %v774_v61 }
 0x2e9   :  { %v804_v1 = vunpack.c.l.b16 %v775_v59 }
 0x2eb   :  { %v1362_v63 = vpop.eup %1361  ;;  %v805_v6 = vpack.c.b16 %v804_v1, %v803_v2 }
 0x2ec   :  { %v921_v62 = vpop.xlane.xlu2 %920  ;;  %v932_v14 = vmul.f32 %v1362_v63, %v1720_v31 }
 0x2ed   :  { %1363 = vrcp.f32 %v921_v62 }
 0x2ee   :  { %v936_v50 = vpack.c.bf16 %v932_v14, %v932_v14 }
 0x2f0   :  { %v465_v3 = vpop.f32.mrf.mxu3  ;;  %v942_v11 = vunpack.c.l.b16 %v936_v50 }
 0x2f1   :  { %v498_v8 = vpack.c.bf16 %v465_v3, %v465_v3 }
 0x2f3   :  { %v1364_v44 = vpop.eup %1363  ;;  %v1763_v19 = vunpack.c.l.b16 %v498_v8 }
 0x2f4   :  { %1245 = vmatmul.msk.bf16.vlgmr.msrb.gmra.mxu3 %vm393_vm1, %v805_v6  ;;  %v946_v45 = vpop.permute.xlu2 %945  ;;  %v933_v23 = vmul.f32 %v1364_v44, %v1731_v49  ;;  %v927_v49 = vpop.xlane.xlu0 %926 }
 0x2f5   :  { %958 = vmatpush.bf16.msrb.mxu2 %v946_v45  ;;  %1365 = vrcp.f32 %v927_v49 }
 0x2f6   :  { %v937_v7 = vpack.c.bf16 %v933_v23, %v933_v23 }
 0x2f8   :  { %v467_v9 = vpop.f32.mrf.mxu3  ;;  %v943_v12 = vunpack.c.l.b16 %v937_v7 }
 0x2f9   :  { %v499_v15 = vpack.c.bf16 %v467_v9, %v467_v9  ;;  %v1287_v9 = vld [vmem:[#allocation8 + $0x8] sm:$0xff] }
 0x2fa   :  { %v944_v17 = vpack.c.b16 %v943_v12, %v942_v11  ;;  %1092 = vmatpush.bf16.msrb.mxu0 %v1287_v9  ;;  %v1286_v11 = vld [vmem:[#allocation8] sm:$0xff] }
 0x2fb   :  { %v1765_v16 = vunpack.c.l.b16 %v499_v15  ;;  %v1366_v24 = vpop.eup %1365 }
 0x2fc   :  { %v971_v31 = vpop.permute.xlu2 %970  ;;  %1248 = vmatmul.msk.bf16.vlgmr.msrb.gmra.mxu2 %vm393_vm1, %v944_v17  ;;  %v935_v60 = vmul.f32 %v1366_v24, %v1733_v4 }
 0x2fd   :  { %v1002_v22 = vpack.c.b16 %v1765_v16, %v1763_v19  ;;  %983 = vmatpush.bf16.msra.mxu3 %v971_v31 }
 0x2fe   :  { %v939_v27 = vpack.c.bf16 %v935_v60, %v935_v60  ;;  %1093 = vmatpush.bf16.msrb.mxu0 %v1286_v11 }
 0x300   :  { %v968_v29 = vunpack.c.l.b16 %v939_v27  ;;  %v1773_v34 = vpop.f32.mrf.mxu3 }
 0x301   :  { %v500_v60 = vpack.c.bf16 %v1773_v34, %v1773_v34 }
 0x303   :  { %v1000_v27 = vunpack.c.l.b16 %v500_v60 }
 0x308   :  { %v1775_v37 = vpop.f32.mrf.mxu3 }
 0x309   :  { %v501_v24 = vpack.c.bf16 %v1775_v37, %v1775_v37 }
 0x310   :  { %v924_v46 = vpop.xlane.xlu1 %923 }
 0x311   :  { %1367 = vrcp.f32 %v924_v46 }
 0x317   :  { %v1368_v25 = vpop.eup %1367 }
 0x318   :  { %v934_v28 = vmul.f32 %v1368_v25, %v1743_v13  ;;  %v1001_v25 = vunpack.c.l.b16 %v501_v24 }
 0x31a   :  { %v938_v5 = vpack.c.bf16 %v934_v28, %v934_v28  ;;  %v1003_v16 = vpack.c.b16 %v1001_v25, %v1000_v27 }
 0x31c   :  { %v967_v32 = vunpack.c.l.b16 %v938_v5 }
 0x31e   :  { %v969_v33 = vpack.c.b16 %v968_v29, %v967_v32 }
 0x320   :  { %1249 = vmatmul.msk.bf16.vlgmr.msra.gmra.mxu3 %vm393_vm1, %v969_v33  ;;  %v1304_v33 = vld [vmem:[%s1805_s4] ss:$0 sm:$0xff]  ;;  %s1512_s4 = smov 128  }
 0x357   :  { %v632_v35 = vpop.f32.mrf.mxu2 }
 0x358   :  { %v662_v36 = vpack.c.bf16 %v632_v35, %v632_v35 }
 0x35a   :  { %v1008_v38 = vunpack.c.l.b16 %v662_v36 }
 0x35f   :  { %v634_v57 = vpop.f32.mrf.mxu2 }
 0x360   :  { %v663_v10 = vpack.c.bf16 %v634_v57, %v634_v57 }
 0x362   :  { %v1009_v4 = vunpack.c.l.b16 %v663_v10 }
 0x364   :  { %v1012_v41 = vpack.c.b16 %v1009_v4, %v1008_v38 }
 0x366   :  { %1014 = vrot.lane.b32.xlu0 %v1012_v41, %s1508_s16 }
 0x367   :  { %v657_v13 = vpop.f32.mrf.mxu3  ;;  %v796_v30 = vpop.f32.mrf.mxu2 }
 0x368   :  { %v664_v42 = vpack.c.bf16 %v657_v13, %v657_v13  ;;  %v826_v40 = vpack.c.bf16 %v796_v30, %v796_v30 }
 0x36a   :  { %v1010_v51 = vunpack.c.l.b16 %v664_v42  ;;  %v1022_v52 = vunpack.c.l.b16 %v826_v40 }
 0x36f   :  { %v659_v43 = vpop.f32.mrf.mxu3  ;;  %v798_v47 = vpop.f32.mrf.mxu2 }
 0x370   :  { %v665_v48 = vpack.c.bf16 %v659_v43, %v659_v43  ;;  %v827_v20 = vpack.c.bf16 %v798_v47, %v798_v47 }
 0x372   :  { %v1011_v53 = vunpack.c.l.b16 %v665_v48  ;;  %v1023_v39 = vunpack.c.l.b16 %v827_v20 }
 0x374   :  { %v1013_v18 = vpack.c.b16 %v1011_v53, %v1010_v51  ;;  %v1026_v54 = vpack.c.b16 %v1023_v39, %v1022_v52 }
 0x376   :  { %1028 = vrot.lane.b32.xlu2 %v1026_v54, %s1509_s17  ;;  %1016 = vrot.lane.b32.xlu1 %v1013_v18, %s1508_s16 }
 0x377   :  { %v821_v0 = vpop.f32.mrf.mxu3 }
 0x378   :  { %v828_v1 = vpack.c.bf16 %v821_v0, %v821_v0 }
 0x37a   :  { %v1024_v3 = vunpack.c.l.b16 %v828_v1 }
 0x37f   :  { %v960_v55 = vpop.f32.mrf.mxu2  ;;  %v823_v58 = vpop.f32.mrf.mxu3 }
 0x380   :  { %v990_v21 = vpack.c.bf16 %v960_v55, %v960_v55  ;;  %v829_v62 = vpack.c.bf16 %v823_v58, %v823_v58 }
 0x382   :  { %v1036_v59 = vunpack.c.l.b16 %v990_v21  ;;  %v1025_v2 = vunpack.c.l.b16 %v829_v62 }
 0x384   :  { %v1027_v14 = vpack.c.b16 %v1025_v2, %v1024_v3 }
 0x387   :  { %v962_v56 = vpop.f32.mrf.mxu2 }
 0x388   :  { %v991_v26 = vpack.c.bf16 %v962_v56, %v962_v56 }
 0x38a   :  { %v1037_v61 = vunpack.c.l.b16 %v991_v26 }
 0x38c   :  { %v1040_v63 = vpack.c.b16 %v1037_v61, %v1036_v59 }
 0x38e   :  { %1042 = vrot.lane.b32.xlu2 %v1040_v63, %s1510_s18 }
 0x396   :  { %1030 = vrot.lane.b32.xlu2 %v1027_v14, %s1509_s17 }
 0x3a3   :  { %v985_v6 = vpop.f32.mrf.mxu3 }
 0x3a4   :  { %v992_v44 = vpack.c.bf16 %v985_v6, %v985_v6 }
 0x3a6   :  { %v1038_v23 = vunpack.c.l.b16 %v992_v44 }
 0x3ab   :  { %v987_v45 = vpop.f32.mrf.mxu3 }
 0x3ac   :  { %v993_v50 = vpack.c.bf16 %v987_v45, %v987_v45 }
 0x3ae   :  { %v1039_v7 = vunpack.c.l.b16 %v993_v50 }
 0x3b0   :  { %v1041_v8 = vpack.c.b16 %v1039_v7, %v1038_v23 }
 0x3b2   :  { %1044 = vrot.lane.b32.xlu0 %v1041_v8, %s1510_s18 }
 0x3d0   :  { %v1029_v12 = vpop.permute.xlu2 %1028 }
 0x3d8   :  { %v1015_v15 = vpop.permute.xlu0 %1014 }
 0x3d9   :  { %v1048_v17 = vsel %vm346_vm0, %v1002_v22, %v1015_v15 }
 0x3da   :  { %v1053_v31 = vsel %vm393_vm1, %v1048_v17, %v1029_v12 }
 0x3e8   :  { %v1043_v49 = vpop.permute.xlu2 %1042  ;;  %v1017_v19 = vpop.permute.xlu1 %1016 }
 0x3e9   :  { %v1058_v46 = vsel %vm1056_vm2, %v1053_v31, %v1043_v49  ;;  %v1051_v28 = vsel %vm346_vm0, %v1003_v16, %v1017_v19 }
 0x3ea   :  { %1258 = vmatmul.msk.bf16.vlgmr.msrb.gmra.mxu0 %vm1081_vm3, %v1058_v46 }
 0x3f0   :  { %v1031_v22 = vpop.permute.xlu2 %1030 }
 0x3f1   :  { %v1055_v5 = vsel %vm393_vm1, %v1051_v28, %v1031_v22 }
 0x424   :  { %v1045_v29 = vpop.permute.xlu0 %1044 }
 0x425   :  { %v1060_v32 = vsel %vm1056_vm2, %v1055_v5, %v1045_v29 }
 0x426   :  { %1259 = vmatmul.msk.bf16.gmra.mxu0 %vm1081_vm3, %v1060_v32 }
 0x467   :  { %v1095_v35 = vpop.f32.mrf.mxu0 }
 0x468   :  { %v1096_v34 = vadd.f32 %v1304_v33, %v1095_v35 }
 0x46a   :  { %1105 = vst [vmem:[#allocation10] sm:$0xff] %v1096_v34 }
 0x46f   :  { %v1097_v36 = vpop.f32.mrf.mxu0 }
 0x470   :  { %v1098_v37 = vadd.f32 %v1304_v33, %v1097_v36 }
 0x472   :  { %1106 = vst [vmem:[#allocation10 + $0x8] sm:$0xff] %v1098_v37 }
 0x4a3   :  { %v1100_v57 = vpop.f32.mrf.mxu0 }
 0x4a4   :  { %v1101_v10 = vadd.f32 %v1304_v33, %v1100_v57 }
 0x4a6   :  { %1107 = vst [vmem:[#allocation10 + $0x10] sm:$0xff] %v1101_v10 }
 0x4ab   :  { %v1102_v38 = vpop.f32.mrf.mxu0 }
 0x4ac   :  { %v1103_v4 = vadd.f32 %v1304_v33, %v1102_v38 }
 0x4ae   :  { %1108 = vst [vmem:[#allocation10 + $0x18] sm:$0xff] %v1103_v4 }
 0x4af   :  { %1121 = dma.vmem_to_hbm [thread:$0]  %s1114_s22, 512, %s1116_s25, [#allocation4], %s1512_s4, %s1512_s4, %s1508_s16  }
 0x4b0   :  { %1495 = dma.done.wait [#allocation4], 512  }
 0x4b1   :  { %1496 = vsyncadd [#allocation4], 4294966784 }
 0x4b2   :  { %1126 = vsyncpa [#allocation3], 1 }
 0x4b3   :  { %1127 = vsyncpa [#allocation6], 1 }
 0x4b4   :  { %1128 = vsyncpa [#allocation9], 1 }
 0x4b5   :  { %1129 = vsyncpa [#allocation4], 1 }

</bundles_post_ra>
